<compile_context>
chip_gen: v5e
topology: v5e:2x2
jax: 0.10.0
libtpu: 0.0.40
codegen_flags: <defaults>
</compile_context>

<pallas_src>
import functools

import numpy as np
import jax
import jax.numpy as jnp
from jax.experimental import pallas as pl
from jax.experimental.pallas import tpu as pltpu


# --------------------------------------------------------------- fused matmul kernels
def _apply_act(y, act):
    if act == "relu":
        return jnp.maximum(y, 0.0)
    if act == "tanh":
        return jnp.tanh(y)
    return y


def _mm_kernel(a_ref, b_ref, o_ref, *, act):
    y = jnp.dot(a_ref[...], b_ref[...], preferred_element_type=jnp.float32)
    o_ref[...] = _apply_act(y, act).astype(o_ref.dtype)


def _mm_bias_kernel(a_ref, b_ref, bias_ref, o_ref, *, act):
    y = jnp.dot(a_ref[...], b_ref[...], preferred_element_type=jnp.float32)
    o_ref[...] = _apply_act(y + bias_ref[...], act).astype(o_ref.dtype)


def _mm_acc_kernel(a_ref, b_ref, o_ref, acc_ref, *, act):
    @pl.when(pl.program_id(2) == 0)
    def _():
        acc_ref[...] = jnp.zeros_like(acc_ref)

    acc_ref[...] += jnp.dot(a_ref[...], b_ref[...], preferred_element_type=jnp.float32)

    @pl.when(pl.program_id(2) == pl.num_programs(2) - 1)
    def _():
        o_ref[...] = _apply_act(acc_ref[...], act).astype(o_ref.dtype)


def _mm_acc_bias_kernel(a_ref, b_ref, bias_ref, o_ref, acc_ref, *, act):
    @pl.when(pl.program_id(2) == 0)
    def _():
        acc_ref[...] = jnp.zeros_like(acc_ref)

    acc_ref[...] += jnp.dot(a_ref[...], b_ref[...], preferred_element_type=jnp.float32)

    @pl.when(pl.program_id(2) == pl.num_programs(2) - 1)
    def _():
        o_ref[...] = _apply_act(acc_ref[...] + bias_ref[...], act).astype(o_ref.dtype)


def _split_tile(dim, cap, quantum):
    """Block size for one dim: the full dim if <= cap (full-dim blocks are always
    layout-legal), else the largest multiple of `quantum` <= cap dividing `dim`;
    falls back to the full dim (no wrapper-side padding is ever needed)."""
    if dim <= cap:
        return dim
    t = (cap // quantum) * quantum
    while t >= quantum:
        if dim % t == 0:
            return t
        t -= quantum
    return dim


def fused_matmul(a, b, bias=None, act="none", out_dtype=jnp.bfloat16):
    """(M, K) @ (K, N) on the MXU: bf16 operands, f32 accumulation, bias/activation
    fused into the epilogue, single store in `out_dtype`.  No pad/slice HBM copies."""
    M, K = a.shape
    K2, N = b.shape
    assert K == K2
    a = a.astype(jnp.bfloat16)
    b = b.astype(jnp.bfloat16)
    tm = _split_tile(M, 512, 8)
    tn = _split_tile(N, 256, 128)   # 256-wide N fills v6e/v7x MXU; >=2 blocks when wide
    tk = _split_tile(K, 1024, 128)
    ksteps = K // tk

    operands = [a, b]
    if bias is not None:
        operands.append(jnp.asarray(bias).reshape(1, N).astype(jnp.float32))

    if ksteps == 1:     # single K step: no accumulator scratch, no pl.when guards
        grid = (M // tm, N // tn)
        in_specs = [pl.BlockSpec((tm, tk), lambda i, j: (i, 0)),
                    pl.BlockSpec((tk, tn), lambda i, j: (0, j))]
        if bias is not None:
            in_specs.append(pl.BlockSpec((1, tn), lambda i, j: (0, j)))
        out_specs = pl.BlockSpec((tm, tn), lambda i, j: (i, j))
        kern = functools.partial(_mm_bias_kernel if bias is not None else _mm_kernel,
                                 act=act)
        scratch = []
        sem = ("parallel", "parallel")
    else:
        grid = (M // tm, N // tn, ksteps)
        in_specs = [pl.BlockSpec((tm, tk), lambda i, j, k: (i, k)),
                    pl.BlockSpec((tk, tn), lambda i, j, k: (k, j))]
        if bias is not None:
            in_specs.append(pl.BlockSpec((1, tn), lambda i, j, k: (0, j)))
        out_specs = pl.BlockSpec((tm, tn), lambda i, j, k: (i, j))
        kern = functools.partial(
            _mm_acc_bias_kernel if bias is not None else _mm_acc_kernel, act=act)
        scratch = [pltpu.VMEM((tm, tn), jnp.float32)]
        sem = ("parallel", "parallel", "arbitrary")

    return pl.pallas_call(
        kern,
        out_shape=jax.ShapeDtypeStruct((M, N), out_dtype),
        grid_spec=pltpu.PrefetchScalarGridSpec(
            num_scalar_prefetch=0, grid=grid, in_specs=in_specs,
            out_specs=out_specs, scratch_shapes=scratch),
        compiler_params=pltpu.CompilerParams(dimension_semantics=sem),
    )(*operands)


# -------------------------------------------- fused BN+ReLU -> ConvTranspose2d kernel
_KTAP = ((3, 1), (2, 0))    # 4x4 kernel rows/cols used by (output parity, 2x2 tap)


def pack_convT_s2(w):
    """ConvTranspose2d(k=4, s=2, p=1) weight (Cin, Cout, 4, 4) -> (4*Cin, 4*Cout):
    rows grouped by 2x2 patch tap (dr, dc), cols grouped by output phase (rp, cp)."""
    cin, cout = w.shape[0], w.shape[1]
    wm = jnp.zeros((4 * cin, 4 * cout), jnp.float32)
    for rp in range(2):
        for cp in range(2):
            for dr in range(2):
                for dc in range(2):
                    sub = w[:, :, _KTAP[rp][dr], _KTAP[cp][dc]]          # (Cin, Cout)
                    r0 = (dr * 2 + dc) * cin
                    c0 = (rp * 2 + cp) * cout
                    wm = wm.at[r0:r0 + cin, c0:c0 + cout].set(sub)
    return wm


def pack_convT_1x1_s1(w):
    """ConvTranspose2d(k=4, s=1, p=0) on a 1x1 input == one matmul.
    (Cin, Cout, 4, 4) -> (Cin, 16*Cout), cols ordered (kh, kw, cout)."""
    cin, cout = w.shape[0], w.shape[1]
    return jnp.transpose(w, (0, 2, 3, 1)).reshape(cin, 16 * cout)


def _convt_s2_kernel(x_ref, scale_ref, shift_ref, w_ref, o_ref, sum_ref, ssq_ref,
                     *, H, W, Cin, Cout, act):
    """One batch element:  BN-affine + ReLU on the input, in-VMEM zero pad + im2col,
    four phase matmuls (f32 acc), optional tanh, phase-split store, and per-channel
    sum / sum-of-squares of the layer output (the next BatchNorm's statistics)."""
    x = x_ref[...].astype(jnp.float32)                               # (H, W, Cin)
    x = jnp.maximum(x * scale_ref[0] + shift_ref[0], 0.0).astype(x_ref.dtype)

    # spatial zero padding, entirely in VMEM
    zr = jnp.zeros((1, W, Cin), x.dtype)
    xp = jnp.concatenate([zr, x, zr], axis=0)                        # (H+2, W, Cin)
    zc = jnp.zeros((H + 2, 1, Cin), x.dtype)
    xp = jnp.concatenate([zc, xp, zc], axis=1)                       # (H+2, W+2, Cin)

    # the nine distinct shifted windows shared by the 4 phases x 4 taps
    win = {(dy, dx): xp[dy:dy + H, dx:dx + W, :].reshape(H * W, Cin)
           for dy in range(3) for dx in range(3)}

    s = jnp.zeros((1, Cout), jnp.float32)
    ss = jnp.zeros((1, Cout), jnp.float32)
    phases = []
    for rp in range(2):
        for cp in range(2):
            patches = jnp.concatenate(
                [win[(rp + dr, cp + dc)] for dr in range(2) for dc in range(2)],
                axis=-1)                                             # (H*W, 4*Cin)
            g = rp * 2 + cp
            y = jnp.dot(patches, w_ref[:, g * Cout:(g + 1) * Cout],
                        preferred_element_type=jnp.float32)          # (H*W, Cout) f32
            if act == "tanh":
                y = jnp.tanh(y)
            s = s + jnp.sum(y, axis=0, keepdims=True)
            ss = ss + jnp.sum(y * y, axis=0, keepdims=True)
            phases.append(y.reshape(H, W, Cout).astype(o_ref.dtype))

    # phase-split store: host-side reshape (B, H, 2, W, 2*Cout) -> (B, 2H, 2W, Cout)
    # is a contiguous (free) reshape, so no XLA pixel-shuffle pass is needed.
    o_ref[:, 0, :, :] = jnp.concatenate([phases[0], phases[1]], axis=-1)
    o_ref[:, 1, :, :] = jnp.concatenate([phases[2], phases[3]], axis=-1)
    sum_ref[...] = s
    ssq_ref[...] = ss


def conv_transpose_s2(h, wm, scale, shift, *, act="none", out_dtype=jnp.bfloat16):
    """Fused [BatchNorm affine + ReLU] -> ConvTranspose2d(k=4, s=2, p=1) [-> tanh].
    h: (B, H, W, Cin) bf16; wm: packed (4*Cin, 4*Cout); scale/shift: (1, Cin) f32.
    Returns ((B, 2H, 2W, Cout), sum_per_channel, sumsq_per_channel)."""
    B, H, W, Cin = h.shape
    assert wm.shape[0] == 4 * Cin and wm.shape[1] % 4 == 0
    cout = wm.shape[1] // 4
    kern = functools.partial(_convt_s2_kernel, H=H, W=W, Cin=Cin, Cout=cout, act=act)
    out, s, ss = pl.pallas_call(
        kern,
        out_shape=(jax.ShapeDtypeStruct((B, H, 2, W, 2 * cout), out_dtype),
                   jax.ShapeDtypeStruct((B, 1, cout), jnp.float32),
                   jax.ShapeDtypeStruct((B, 1, cout), jnp.float32)),
        grid_spec=pltpu.PrefetchScalarGridSpec(
            num_scalar_prefetch=0,
            grid=(B,),
            in_specs=[pl.BlockSpec((None, H, W, Cin), lambda b: (b, 0, 0, 0)),
                      pl.BlockSpec((1, Cin), lambda b: (0, 0)),
                      pl.BlockSpec((1, Cin), lambda b: (0, 0)),
                      pl.BlockSpec((4 * Cin, 4 * cout), lambda b: (0, 0))],
            out_specs=[pl.BlockSpec((None, H, 2, W, 2 * cout),
                                    lambda b: (b, 0, 0, 0, 0)),
                       pl.BlockSpec((None, 1, cout), lambda b: (b, 0, 0)),
                       pl.BlockSpec((None, 1, cout), lambda b: (b, 0, 0))]),
        compiler_params=pltpu.CompilerParams(dimension_semantics=("parallel",)),
    )(h.astype(jnp.bfloat16), scale, shift, wm.astype(jnp.bfloat16))
    y = out.reshape(B, 2 * H, 2 * W, cout)         # contiguous merge -> free reshape
    return y, jnp.sum(s, axis=0)[0], jnp.sum(ss, axis=0)[0]


def _bn_affine(s, ss, count, gamma, beta, eps=1e-5):
    """Fold training-mode BatchNorm2d (biased variance, batch stats) into scale/shift."""
    mean = s / count
    var = jnp.maximum(ss / count - mean * mean, 0.0)
    # TODO(synk): E[x^2]-E[x]^2 in f32 is adequate at these activation scales; switch
    #             to a two-pass/Welford reduction if activations grow much larger.
    scale = gamma * jax.lax.rsqrt(var + eps)
    shift = beta - mean * scale
    return (scale.reshape(1, -1).astype(jnp.float32),
            shift.reshape(1, -1).astype(jnp.float32))


# ------------------------------------------------------------------------- parameters
def init_params(key, *, nc=3, panel_hw=16, seq_size=3, embed_dim=32,
                latent_dim=16, ngf=8):
    ks = jax.random.split(key, 12)
    in_feat = nc * panel_hw * panel_hw
    p = {}

    # TODO(synk): the backbone is an injected nn.Module in PyTorch; stand-in here is a
    #             linear projection (+ReLU) producing embed_dim features per panel.
    p["bb_w"] = (0.02 * jax.random.normal(ks[0], (in_feat, embed_dim),
                                          jnp.float32)).astype(jnp.bfloat16)
    p["bb_b"] = jnp.zeros((embed_dim,), jnp.float32)
    p["fc_w"] = (0.02 * jax.random.normal(ks[1], (seq_size * embed_dim, 2 * latent_dim),
                                          jnp.float32)).astype(jnp.bfloat16)
    p["fc_b"] = jnp.zeros((2 * latent_dim,), jnp.float32)

    # DCGAN generator (image_size=64): ConvTranspose2d weights (Cin, Cout, 4, 4), no bias
    chans = [(latent_dim, ngf * 8), (ngf * 8, ngf * 4), (ngf * 4, ngf * 2),
             (ngf * 2, ngf), (ngf, nc)]
    gen = []
    for li, (cin, cout) in enumerate(chans):
        w = 0.02 * jax.random.normal(ks[2 + li], (cin, cout, 4, 4), jnp.float32)
        wm = pack_convT_1x1_s1(w) if li == 0 else pack_convT_s2(w)
        layer = dict(wm=wm.astype(jnp.bfloat16), gamma=None, beta=None)
        if li < 4:   # BatchNorm2d follows every generator layer except the last
            layer["gamma"] = 1.0 + 0.02 * jax.random.normal(ks[7 + li], (cout,),
                                                            jnp.float32)
            layer["beta"] = jnp.zeros((cout,), jnp.float32)
        gen.append(layer)
    p["gen"] = gen
    return p


# ------------------------------------------------------------------------ forward pass
def ssuper_dcgan_forward(params, x, eps_key, *, latent_dim=16):
    """x: (B, S, C, H, W) f32 panels.  Mirrors SSuperDCGAN.forward:
    returns (z, None, mu, x_recon, lg_std)."""
    B, S, C, H, W = x.shape

    # ---- PlainSequentialEncoder: per-panel backbone + seq-concat fc (MXU kernels) ----
    flat = x.reshape(B * S, C * H * W)
    emb = fused_matmul(flat, params["bb_w"], bias=params["bb_b"], act="relu")
    enc = fused_matmul(emb.reshape(B, -1), params["fc_w"], bias=params["fc_b"],
                       out_dtype=jnp.float32)
    mu = enc[:, :latent_dim]
    lg_std = enc[:, latent_dim:2 * latent_dim]

    # ---- z = Normal(mu, exp(lg_std)).rsample()  (tiny: plain JAX per review) --------
    eps = jax.random.normal(eps_key, mu.shape, jnp.float32)
    z = mu + jnp.exp(lg_std) * eps

    # ---- DCGAN generator (NHWC, real channel counts, bf16 activations) --------------
    gen = params["gen"]
    wm0 = gen[0]["wm"]
    c0 = wm0.shape[1] // 16
    h = fused_matmul(z, wm0).reshape(B, 4, 4, c0)        # ConvT(latent, ngf*8, 4, 1, 0)
    hf = h.astype(jnp.float32)                           # 2*4*4*64 elems: tiny stats op
    s = jnp.sum(hf, axis=(0, 1, 2))
    ss = jnp.sum(hf * hf, axis=(0, 1, 2))
    count = B * 4 * 4

    for li in (1, 2, 3, 4):
        scale, shift = _bn_affine(s, ss, count, gen[li - 1]["gamma"],
                                  gen[li - 1]["beta"])
        last = li == 4
        h, s, ss = conv_transpose_s2(
            h, gen[li]["wm"], scale, shift,
            act="tanh" if last else "none",
            out_dtype=jnp.float32 if last else jnp.bfloat16)
        count *= 4

    x_recon = jnp.transpose(h, (0, 3, 1, 2))             # NCHW (B, nc, 64, 64) f32
    return z[:, :, None, None], None, mu, x_recon, lg_std


# -------------------------------------------------------------- fused conv kernel test
def _self_test_convT_s2():
    """Exact check of the fused BN-affine + ReLU + ConvTranspose2d(k=4, s=2, p=1)
    kernel (incl. phase packing, pixel-shuffle layout and the stats side outputs).
    Small-integer inputs are exactly representable in bf16, so tolerances are tight."""
    rng = np.random.RandomState(0)
    B, H, W, cin, cout = 2, 4, 4, 8, 8
    x = rng.randint(-1, 2, size=(B, H, W, cin)).astype(np.float32)
    w = rng.randint(-1, 2, size=(cin, cout, 4, 4)).astype(np.float32)
    scale = rng.randint(1, 3, size=(cin,)).astype(np.float32)
    shift = rng.randint(-1, 2, size=(cin,)).astype(np.float32)

    a = np.maximum(x * scale + shift, 0.0)
    ref = np.zeros((B, 2 * H, 2 * W, cout), np.float64)
    for b in range(B):
        for ih in range(H):
            for iw in range(W):
                for kh in range(4):
                    for kw in range(4):
                        oh, ow = 2 * ih - 1 + kh, 2 * iw - 1 + kw
                        if 0 <= oh < 2 * H and 0 <= ow < 2 * W:
                            ref[b, oh, ow] += a[b, ih, iw] @ w[:, :, kh, kw]

    wm = pack_convT_s2(jnp.asarray(w))
    got, s, ss = conv_transpose_s2(
        jnp.asarray(x), wm, jnp.asarray(scale).reshape(1, -1),
        jnp.asarray(shift).reshape(1, -1))
    got = np.asarray(got.astype(jnp.float32), np.float64)
    err = np.abs(ref - got).max()
    assert err < 1e-3, err
    assert np.allclose(np.asarray(s), ref.sum((0, 1, 2)), atol=1e-2), "bad sum stats"
    assert np.allclose(np.asarray(ss), (ref ** 2).sum((0, 1, 2)), atol=1e-1), "bad sq"


# --------------------------------------------------------------------------------- main
if __name__ == "__main__":
    _self_test_convT_s2()   # exact validation of the fused ConvTranspose kernel

    B, S, C, HW = 2, 3, 3, 16
    latent_dim, embed_dim, ngf, nc = 16, 32, 8, 3

    root = jax.random.PRNGKey(0)
    k_params, k_x, k_eps = jax.random.split(root, 3)
    params = init_params(k_params, nc=nc, panel_hw=HW, seq_size=S,
                         embed_dim=embed_dim, latent_dim=latent_dim, ngf=ngf)
    x = jax.random.normal(k_x, (B, S, C, HW, HW), jnp.float32)

    fwd = jax.jit(functools.partial(ssuper_dcgan_forward, latent_dim=latent_dim))
    z, none_out, mu, x_recon, lg_std = fwd(params, x, k_eps)
    jax.block_until_ready((z, mu, x_recon, lg_std))

    assert z.shape == (B, latent_dim, 1, 1)
    assert mu.shape == (B, latent_dim)
    assert lg_std.shape == (B, latent_dim)
    assert x_recon.shape == (B, nc, 64, 64)
    assert none_out is None
    assert bool(jnp.all(jnp.isfinite(x_recon)))
    print("KERNEL_OK")
</pallas_src>

<mosaic_0001>
module attributes {stable_mosaic.version = 11 : i64} {
  func.func @_convt_s2_kernel(%arg0: i32, %arg1: memref<1x4x4x8xbf16, #tpu.memory_space<vmem>>, %arg2: memref<1x8xf32, #tpu.memory_space<vmem>>, %arg3: memref<1x8xf32, #tpu.memory_space<vmem>>, %arg4: memref<32x32xbf16, #tpu.memory_space<vmem>>, %arg5: memref<1x4x2x4x16xbf16, #tpu.memory_space<vmem>>, %arg6: memref<1x1x8xf32, #tpu.memory_space<vmem>>, %arg7: memref<1x1x8xf32, #tpu.memory_space<vmem>>) attributes {dimension_semantics = [#tpu.dimension_semantics<parallel>], iteration_bounds = array<i64: 2>, scalar_prefetch = 0 : i64, scratch_operands = 0 : i64, tpu.core_type = #tpu.core_type<tc>, window_params = [{transform_indices = @transform_0, window_bounds = array<i64: 1, 4, 4, 8>}, {pipeline_mode = #tpu.pipeline_mode<synchronous>, transform_indices = @transform_1, window_bounds = array<i64: 1, 8>}, {pipeline_mode = #tpu.pipeline_mode<synchronous>, transform_indices = @transform_2, window_bounds = array<i64: 1, 8>}, {pipeline_mode = #tpu.pipeline_mode<synchronous>, transform_indices = @transform_3, window_bounds = array<i64: 32, 32>}, {transform_indices = @transform_4, window_bounds = array<i64: 1, 4, 2, 4, 16>}, {transform_indices = @transform_5, window_bounds = array<i64: 1, 1, 8>}, {transform_indices = @transform_6, window_bounds = array<i64: 1, 1, 8>}]} {
    %c0 = arith.constant 0 : index
    %c0_0 = arith.constant 0 : index
    %c0_1 = arith.constant 0 : index
    %c0_2 = arith.constant 0 : index
    %0 = vector.load %arg1[%c0, %c0_0, %c0_1, %c0_2] : memref<1x4x4x8xbf16, #tpu.memory_space<vmem>>, vector<1x4x4x8xbf16>
    %1 = vector.shape_cast %0 : vector<1x4x4x8xbf16> to vector<4x4x8xbf16>
    %2 = arith.extf %1 : vector<4x4x8xbf16> to vector<4x4x8xf32>
    %c0_3 = arith.constant 0 : index
    %c0_4 = arith.constant 0 : index
    %3 = vector.load %arg2[%c0_3, %c0_4] : memref<1x8xf32, #tpu.memory_space<vmem>>, vector<1x8xf32>
    %4 = vector.shape_cast %3 : vector<1x8xf32> to vector<8xf32>
    %5 = vector.shape_cast %4 : vector<8xf32> to vector<1x1x8xf32>
    %6 = vector.broadcast %5 : vector<1x1x8xf32> to vector<4x4x8xf32>
    %7 = arith.mulf %2, %6 : vector<4x4x8xf32>
    %c0_5 = arith.constant 0 : index
    %c0_6 = arith.constant 0 : index
    %8 = vector.load %arg3[%c0_5, %c0_6] : memref<1x8xf32, #tpu.memory_space<vmem>>, vector<1x8xf32>
    %9 = vector.shape_cast %8 : vector<1x8xf32> to vector<8xf32>
    %10 = vector.shape_cast %9 : vector<8xf32> to vector<1x1x8xf32>
    %11 = vector.broadcast %10 : vector<1x1x8xf32> to vector<4x4x8xf32>
    %12 = arith.addf %7, %11 : vector<4x4x8xf32>
    %cst = arith.constant 0.000000e+00 : f32
    %13 = vector.broadcast %cst : f32 to vector<4x4x8xf32>
    %14 = arith.maximumf %12, %13 : vector<4x4x8xf32>
    %15 = arith.truncf %14 : vector<4x4x8xf32> to vector<4x4x8xbf16>
    %cst_7 = arith.constant 0.000000e+00 : bf16
    %16 = vector.broadcast %cst_7 : bf16 to vector<1x4x8xbf16>
    %17 = tpu.concatenate %16, %15, %16 in 0 : vector<1x4x8xbf16>, vector<4x4x8xbf16>, vector<1x4x8xbf16> -> vector<6x4x8xbf16>
    %cst_8 = arith.constant 0.000000e+00 : bf16
    %18 = vector.broadcast %cst_8 : bf16 to vector<6x1x8xbf16>
    %19 = tpu.concatenate %18, %17, %18 in 1 : vector<6x1x8xbf16>, vector<6x4x8xbf16>, vector<6x1x8xbf16> -> vector<6x6x8xbf16>
    %20 = vector.extract_strided_slice %19 {offsets = [0, 0, 0], sizes = [4, 4, 8], strides = [1, 1, 1]} : vector<6x6x8xbf16> to vector<4x4x8xbf16>
    %21 = vector.shape_cast %20 : vector<4x4x8xbf16> to vector<16x8xbf16>
    %22 = vector.extract_strided_slice %19 {offsets = [0, 1, 0], sizes = [4, 4, 8], strides = [1, 1, 1]} : vector<6x6x8xbf16> to vector<4x4x8xbf16>
    %23 = vector.shape_cast %22 : vector<4x4x8xbf16> to vector<16x8xbf16>
    %24 = vector.extract_strided_slice %19 {offsets = [0, 2, 0], sizes = [4, 4, 8], strides = [1, 1, 1]} : vector<6x6x8xbf16> to vector<4x4x8xbf16>
    %25 = vector.shape_cast %24 : vector<4x4x8xbf16> to vector<16x8xbf16>
    %26 = vector.extract_strided_slice %19 {offsets = [1, 0, 0], sizes = [4, 4, 8], strides = [1, 1, 1]} : vector<6x6x8xbf16> to vector<4x4x8xbf16>
    %27 = vector.shape_cast %26 : vector<4x4x8xbf16> to vector<16x8xbf16>
    %28 = vector.extract_strided_slice %19 {offsets = [1, 1, 0], sizes = [4, 4, 8], strides = [1, 1, 1]} : vector<6x6x8xbf16> to vector<4x4x8xbf16>
    %29 = vector.shape_cast %28 : vector<4x4x8xbf16> to vector<16x8xbf16>
    %30 = vector.extract_strided_slice %19 {offsets = [1, 2, 0], sizes = [4, 4, 8], strides = [1, 1, 1]} : vector<6x6x8xbf16> to vector<4x4x8xbf16>
    %31 = vector.shape_cast %30 : vector<4x4x8xbf16> to vector<16x8xbf16>
    %32 = vector.extract_strided_slice %19 {offsets = [2, 0, 0], sizes = [4, 4, 8], strides = [1, 1, 1]} : vector<6x6x8xbf16> to vector<4x4x8xbf16>
    %33 = vector.shape_cast %32 : vector<4x4x8xbf16> to vector<16x8xbf16>
    %34 = vector.extract_strided_slice %19 {offsets = [2, 1, 0], sizes = [4, 4, 8], strides = [1, 1, 1]} : vector<6x6x8xbf16> to vector<4x4x8xbf16>
    %35 = vector.shape_cast %34 : vector<4x4x8xbf16> to vector<16x8xbf16>
    %36 = vector.extract_strided_slice %19 {offsets = [2, 2, 0], sizes = [4, 4, 8], strides = [1, 1, 1]} : vector<6x6x8xbf16> to vector<4x4x8xbf16>
    %37 = vector.shape_cast %36 : vector<4x4x8xbf16> to vector<16x8xbf16>
    %cst_9 = arith.constant 0.000000e+00 : f32
    %38 = vector.broadcast %cst_9 : f32 to vector<1x8xf32>
    %cst_10 = arith.constant 0.000000e+00 : f32
    %39 = vector.broadcast %cst_10 : f32 to vector<1x8xf32>
    %40 = tpu.concatenate %21, %23, %27, %29 in 1 : vector<16x8xbf16>, vector<16x8xbf16>, vector<16x8xbf16>, vector<16x8xbf16> -> vector<16x32xbf16>
    %c0_11 = arith.constant 0 : index
    %c0_12 = arith.constant 0 : index
    %41 = vector.load %arg4[%c0_11, %c0_12] : memref<32x32xbf16, #tpu.memory_space<vmem>>, vector<32x8xbf16>
    %cst_13 = arith.constant dense<0.000000e+00> : vector<16x8xf32>
    %42 = tpu.matmul %40, %41, %cst_13 {dimension_numbers = #tpu.dot_dimension_numbers<[1], [0], [0], [1], [0, 0, 1, 1], [], []>} : vector<16x32xbf16>, vector<32x8xbf16>, vector<16x8xf32> -> vector<16x8xf32>
    %cst_14 = arith.constant dense<0.000000e+00> : vector<8xf32>
    %43 = vector.multi_reduction <add>, %42, %cst_14 [0] : vector<16x8xf32> to vector<8xf32>
    %44 = vector.shape_cast %43 : vector<8xf32> to vector<1x8xf32>
    %45 = arith.addf %38, %44 : vector<1x8xf32>
    %46 = arith.mulf %42, %42 : vector<16x8xf32>
    %cst_15 = arith.constant dense<0.000000e+00> : vector<8xf32>
    %47 = vector.multi_reduction <add>, %46, %cst_15 [0] : vector<16x8xf32> to vector<8xf32>
    %48 = vector.shape_cast %47 : vector<8xf32> to vector<1x8xf32>
    %49 = arith.addf %39, %48 : vector<1x8xf32>
    %50 = vector.shape_cast %42 : vector<16x8xf32> to vector<4x4x8xf32>
    %51 = arith.truncf %50 : vector<4x4x8xf32> to vector<4x4x8xbf16>
    %52 = tpu.concatenate %23, %25, %29, %31 in 1 : vector<16x8xbf16>, vector<16x8xbf16>, vector<16x8xbf16>, vector<16x8xbf16> -> vector<16x32xbf16>
    %c0_16 = arith.constant 0 : index
    %c8 = arith.constant 8 : index
    %53 = vector.load %arg4[%c0_16, %c8] : memref<32x32xbf16, #tpu.memory_space<vmem>>, vector<32x8xbf16>
    %cst_17 = arith.constant dense<0.000000e+00> : vector<16x8xf32>
    %54 = tpu.matmul %52, %53, %cst_17 {dimension_numbers = #tpu.dot_dimension_numbers<[1], [0], [0], [1], [0, 0, 1, 1], [], []>} : vector<16x32xbf16>, vector<32x8xbf16>, vector<16x8xf32> -> vector<16x8xf32>
    %cst_18 = arith.constant dense<0.000000e+00> : vector<8xf32>
    %55 = vector.multi_reduction <add>, %54, %cst_18 [0] : vector<16x8xf32> to vector<8xf32>
    %56 = vector.shape_cast %55 : vector<8xf32> to vector<1x8xf32>
    %57 = arith.addf %45, %56 : vector<1x8xf32>
    %58 = arith.mulf %54, %54 : vector<16x8xf32>
    %cst_19 = arith.constant dense<0.000000e+00> : vector<8xf32>
    %59 = vector.multi_reduction <add>, %58, %cst_19 [0] : vector<16x8xf32> to vector<8xf32>
    %60 = vector.shape_cast %59 : vector<8xf32> to vector<1x8xf32>
    %61 = arith.addf %49, %60 : vector<1x8xf32>
    %62 = vector.shape_cast %54 : vector<16x8xf32> to vector<4x4x8xf32>
    %63 = arith.truncf %62 : vector<4x4x8xf32> to vector<4x4x8xbf16>
    %64 = tpu.concatenate %27, %29, %33, %35 in 1 : vector<16x8xbf16>, vector<16x8xbf16>, vector<16x8xbf16>, vector<16x8xbf16> -> vector<16x32xbf16>
    %c0_20 = arith.constant 0 : index
    %c16 = arith.constant 16 : index
    %65 = vector.load %arg4[%c0_20, %c16] : memref<32x32xbf16, #tpu.memory_space<vmem>>, vector<32x8xbf16>
    %cst_21 = arith.constant dense<0.000000e+00> : vector<16x8xf32>
    %66 = tpu.matmul %64, %65, %cst_21 {dimension_numbers = #tpu.dot_dimension_numbers<[1], [0], [0], [1], [0, 0, 1, 1], [], []>} : vector<16x32xbf16>, vector<32x8xbf16>, vector<16x8xf32> -> vector<16x8xf32>
    %cst_22 = arith.constant dense<0.000000e+00> : vector<8xf32>
    %67 = vector.multi_reduction <add>, %66, %cst_22 [0] : vector<16x8xf32> to vector<8xf32>
    %68 = vector.shape_cast %67 : vector<8xf32> to vector<1x8xf32>
    %69 = arith.addf %57, %68 : vector<1x8xf32>
    %70 = arith.mulf %66, %66 : vector<16x8xf32>
    %cst_23 = arith.constant dense<0.000000e+00> : vector<8xf32>
    %71 = vector.multi_reduction <add>, %70, %cst_23 [0] : vector<16x8xf32> to vector<8xf32>
    %72 = vector.shape_cast %71 : vector<8xf32> to vector<1x8xf32>
    %73 = arith.addf %61, %72 : vector<1x8xf32>
    %74 = vector.shape_cast %66 : vector<16x8xf32> to vector<4x4x8xf32>
    %75 = arith.truncf %74 : vector<4x4x8xf32> to vector<4x4x8xbf16>
    %76 = tpu.concatenate %29, %31, %35, %37 in 1 : vector<16x8xbf16>, vector<16x8xbf16>, vector<16x8xbf16>, vector<16x8xbf16> -> vector<16x32xbf16>
    %c0_24 = arith.constant 0 : index
    %c24 = arith.constant 24 : index
    %77 = vector.load %arg4[%c0_24, %c24] : memref<32x32xbf16, #tpu.memory_space<vmem>>, vector<32x8xbf16>
    %cst_25 = arith.constant dense<0.000000e+00> : vector<16x8xf32>
    %78 = tpu.matmul %76, %77, %cst_25 {dimension_numbers = #tpu.dot_dimension_numbers<[1], [0], [0], [1], [0, 0, 1, 1], [], []>} : vector<16x32xbf16>, vector<32x8xbf16>, vector<16x8xf32> -> vector<16x8xf32>
    %cst_26 = arith.constant dense<0.000000e+00> : vector<8xf32>
    %79 = vector.multi_reduction <add>, %78, %cst_26 [0] : vector<16x8xf32> to vector<8xf32>
    %80 = vector.shape_cast %79 : vector<8xf32> to vector<1x8xf32>
    %81 = arith.addf %69, %80 : vector<1x8xf32>
    %82 = arith.mulf %78, %78 : vector<16x8xf32>
    %cst_27 = arith.constant dense<0.000000e+00> : vector<8xf32>
    %83 = vector.multi_reduction <add>, %82, %cst_27 [0] : vector<16x8xf32> to vector<8xf32>
    %84 = vector.shape_cast %83 : vector<8xf32> to vector<1x8xf32>
    %85 = arith.addf %73, %84 : vector<1x8xf32>
    %86 = vector.shape_cast %78 : vector<16x8xf32> to vector<4x4x8xf32>
    %87 = arith.truncf %86 : vector<4x4x8xf32> to vector<4x4x8xbf16>
    %88 = tpu.concatenate %51, %63 in 2 : vector<4x4x8xbf16>, vector<4x4x8xbf16> -> vector<4x4x16xbf16>
    %c0_28 = arith.constant 0 : index
    %c0_29 = arith.constant 0 : index
    %c0_30 = arith.constant 0 : index
    %c0_31 = arith.constant 0 : index
    %c0_32 = arith.constant 0 : index
    %89 = vector.load %arg5[%c0_28, %c0_29, %c0_30, %c0_31, %c0_32] : memref<1x4x2x4x16xbf16, #tpu.memory_space<vmem>>, vector<1x4x1x4x16xbf16>
    %90 = vector.shape_cast %89 : vector<1x4x1x4x16xbf16> to vector<4x4x16xbf16>
    %91 = vector.shape_cast %88 : vector<4x4x16xbf16> to vector<1x4x1x4x16xbf16>
    tpu.vector_store %arg5[%c0_28, %c0_29, %c0_30, %c0_31, %c0_32], %91 {strides = array<i32>} : memref<1x4x2x4x16xbf16, #tpu.memory_space<vmem>>, vector<1x4x1x4x16xbf16>,
    %92 = tpu.concatenate %75, %87 in 2 : vector<4x4x8xbf16>, vector<4x4x8xbf16> -> vector<4x4x16xbf16>
    %c0_33 = arith.constant 0 : index
    %c0_34 = arith.constant 0 : index
    %c1 = arith.constant 1 : index
    %c0_35 = arith.constant 0 : index
    %c0_36 = arith.constant 0 : index
    %93 = vector.load %arg5[%c0_33, %c0_34, %c1, %c0_35, %c0_36] : memref<1x4x2x4x16xbf16, #tpu.memory_space<vmem>>, vector<1x4x1x4x16xbf16>
    %94 = vector.shape_cast %93 : vector<1x4x1x4x16xbf16> to vector<4x4x16xbf16>
    %95 = vector.shape_cast %92 : vector<4x4x16xbf16> to vector<1x4x1x4x16xbf16>
    tpu.vector_store %arg5[%c0_33, %c0_34, %c1, %c0_35, %c0_36], %95 {strides = array<i32>} : memref<1x4x2x4x16xbf16, #tpu.memory_space<vmem>>, vector<1x4x1x4x16xbf16>,
    %c0_37 = arith.constant 0 : index
    %c0_38 = arith.constant 0 : index
    %c0_39 = arith.constant 0 : index
    %96 = vector.load %arg6[%c0_37, %c0_38, %c0_39] : memref<1x1x8xf32, #tpu.memory_space<vmem>>, vector<1x1x8xf32>
    %97 = vector.shape_cast %96 : vector<1x1x8xf32> to vector<1x8xf32>
    %98 = vector.shape_cast %81 : vector<1x8xf32> to vector<1x1x8xf32>
    tpu.vector_store %arg6[%c0_37, %c0_38, %c0_39], %98 {strides = array<i32>} : memref<1x1x8xf32, #tpu.memory_space<vmem>>, vector<1x1x8xf32>,
    %c0_40 = arith.constant 0 : index
    %c0_41 = arith.constant 0 : index
    %c0_42 = arith.constant 0 : index
    %99 = vector.load %arg7[%c0_40, %c0_41, %c0_42] : memref<1x1x8xf32, #tpu.memory_space<vmem>>, vector<1x1x8xf32>
    %100 = vector.shape_cast %99 : vector<1x1x8xf32> to vector<1x8xf32>
    %101 = vector.shape_cast %85 : vector<1x8xf32> to vector<1x1x8xf32>
    tpu.vector_store %arg7[%c0_40, %c0_41, %c0_42], %101 {strides = array<i32>} : memref<1x1x8xf32, #tpu.memory_space<vmem>>, vector<1x1x8xf32>,
    return
  }
  func.func @transform_0(%arg0: i32) -> (i32, i32, i32, i32) {
    %c0_i32 = arith.constant 0 : i32
    %c0_i32_0 = arith.constant 0 : i32
    %c0_i32_1 = arith.constant 0 : i32
    %c0_i32_2 = arith.constant 0 : i32
    return %arg0, %c0_i32, %c0_i32_0, %c0_i32_1 : i32, i32, i32, i32
  }
  func.func @transform_1(%arg0: i32) -> (i32, i32) {
    %c0_i32 = arith.constant 0 : i32
    %c0_i32_0 = arith.constant 0 : i32
    %c0_i32_1 = arith.constant 0 : i32
    return %c0_i32, %c0_i32_0 : i32, i32
  }
  func.func @transform_2(%arg0: i32) -> (i32, i32) {
    %c0_i32 = arith.constant 0 : i32
    %c0_i32_0 = arith.constant 0 : i32
    %c0_i32_1 = arith.constant 0 : i32
    return %c0_i32, %c0_i32_0 : i32, i32
  }
  func.func @transform_3(%arg0: i32) -> (i32, i32) {
    %c0_i32 = arith.constant 0 : i32
    %c0_i32_0 = arith.constant 0 : i32
    %c0_i32_1 = arith.constant 0 : i32
    return %c0_i32, %c0_i32_0 : i32, i32
  }
  func.func @transform_4(%arg0: i32) -> (i32, i32, i32, i32, i32) {
    %c0_i32 = arith.constant 0 : i32
    %c0_i32_0 = arith.constant 0 : i32
    %c0_i32_1 = arith.constant 0 : i32
    %c0_i32_2 = arith.constant 0 : i32
    %c0_i32_3 = arith.constant 0 : i32
    return %arg0, %c0_i32, %c0_i32_0, %c0_i32_1, %c0_i32_2 : i32, i32, i32, i32, i32
  }
  func.func @transform_5(%arg0: i32) -> (i32, i32, i32) {
    %c0_i32 = arith.constant 0 : i32
    %c0_i32_0 = arith.constant 0 : i32
    %c0_i32_1 = arith.constant 0 : i32
    return %arg0, %c0_i32, %c0_i32_0 : i32, i32, i32
  }
  func.func @transform_6(%arg0: i32) -> (i32, i32, i32) {
    %c0_i32 = arith.constant 0 : i32
    %c0_i32_0 = arith.constant 0 : i32
    %c0_i32_1 = arith.constant 0 : i32
    return %arg0, %c0_i32, %c0_i32_0 : i32, i32, i32
  }
}

</mosaic_0001>

<bundles_post_ra>
// kernel: tpu_custom_call.1
= control target key start
LH: loop header
LB: loop body
LE: loop exit
PB: predicated region body
PF: predicated region fallthrough
CT: control target
= control target key end

     0   :  { %s2218_s0 = inlined_call_operand.hbm [shape: bf16[2,4,4,8], index: 0, kind: input, shape index: {}]   ;;  %s2219_s1 = inlined_call_operand.hbm [shape: f32[1,8], index: 1, kind: input, shape index: {}]   ;;  %s2220_s2 = inlined_call_operand.vmem [shape: f32[1,8], index: 2, kind: input, shape index: {}]   ;;  %s2221_s3 = inlined_call_operand.hbm [shape: bf16[32,32], index: 3, kind: input, shape index: {}]   ;;  %s2222_s4 = inlined_call_operand.hbm [shape: bf16[2,4,2,4,16], index: 4, kind: output, shape index: {0}]   ;;  %s2223_s5 = inlined_call_operand.hbm [shape: f32[2,1,8], index: 5, kind: output, shape index: {1}]   ;;  %s2224_s6 = inlined_call_operand.hbm [shape: f32[2,1,8], index: 6, kind: output, shape index: {2}]  }
   0x1   :  { %2228 = sst [smem:[#allocation18_spill]] %s2219_s1 }
   0x2   :  { %2229 = sst [smem:[#allocation19_spill]] %s2221_s3 }
   0x3   :  { %12 = vsyncpa [#allocation3], 0 }
   0x4   :  { %14 = vsyncpa [#allocation3 + $0x1], 0 }
   0x5   :  { %15 = vsyncpa [#allocation6], 0 }
   0x6   :  { %16 = vsyncpa [#allocation4], 0 }
   0x7   :  { %18 = vsyncpa [#allocation4 + $0x1], 0 }
   0x8   :  { %19 = vsyncpa [#allocation10], 0 }
   0x9   :  { %21 = vsyncpa [#allocation10 + $0x1], 0  ;;  %s1708_s21 = smov 0   ;;  %s1710_s22 = smov 0  }
   0xa   :  { %s1712_s23 = smov 0   ;;  %s1714_s24 = smov 0  }
   0xb LB: > { %s1729_s25 = sadd.s32 4294967295, %s1656_s24   ;;  %s2225_s26 = sadd.s32 4294967294, %s1656_s24   ;;  %s1656_s24 = sphi %s1714_s24, %s2250_s24   ;;  %s1652_s23 = sphi %s1712_s23, %s2254_s23   ;;  %s1648_s22 = sphi %s1710_s22, %s2253_s22   ;;  %s1644_s21 = sphi %s1708_s21, %s2252_s21  }
   0xc   : > { %s1733_s27 = sadd.s32 1, %s1656_s24   ;;  %s34_s28 = sadd.s32 1, %s1652_s23 }
   0xd   : > { %2230 = sst [smem:[#allocation16_spill]] %s1733_s27  ;;  %s31_s29 = ssub.s32 %s1656_s24, %s1733_s27 }
   0xe   : > { %p41_p0 = scmp.ne.s32.totalorder %s1652_s23, %s1648_s22  ;;  %p32_p1 = scmp.eq.s32.totalorder %s31_s29, 0 }
   0xf   : > { %p42_p2 = scmp.eq.s32.totalorder %s1656_s24, 0  ;;  %p47_p3 = scmp.ne.s32.totalorder %s1648_s22, %s1644_s21 }
  0x10   : > { %p48_p4 = scmp.eq.s32.totalorder %s1729_s25, 0  ;;  %p134_p7 = scmp.eq.s32.totalorder %s1729_s25, 1 }
  0x11   : > { %s1745_s30 = scalar_select %p32_p1, %s1652_s23, %s34_s28  }
  0x12   : > { %p1747_p5 = por %p42_p2, %p41_p0  ;;  %p1753_p6 = por %p48_p4, %p47_p3 }
  0x13   : > { %2231 = sst [smem:[#allocation17_spill]] %s1745_s30  ;;  %p140_p8 = scmp.eq.s32.totalorder %s2225_s26, 1 }
  0x14   : > { %p1272_p9 = scmp.ge.s32.totalorder %s1656_s24, 1  ;;  %p199_p10 = scmp.lt.s32.totalorder %s1656_s24, 3 }
  0x15   : > { %p1762_p11 = por %p134_p7, %p41_p0  ;;  %p1766_p12 = por %p140_p8, %p47_p3 }
  0x16   : > { %p1770_p13 = pnand %p1272_p9, %p199_p10  ;;  %s2237_s1 = sld [smem:[#allocation18_spill]] }
  0x17   : > { %s1658_s15 = smov [#allocation5]   ;;  %p1383_p3 = scmp.lt.s32.totalorder %s1656_s24, 2 }
  0x18   : > { %p1360_p1 = pneg %p1770_p13  ;;  %s213_s16 = sshll.u32 %s1658_s15, 4  ;;  %s214_s16 = int_to_ptr.vmem [resolvable:$true] %s213_s16 }
  0x19   : > { %s2238_s3 = sld [smem:[#allocation19_spill]]  ;;  %p1788_p7 = pnand %p1383_p3, %p1747_p5 }
  0x1a   : > { %p1361_p2 = pnand %p1360_p1, %p48_p4  ;;  %s1659_s28 = smov [#allocation7]  }
  0x1b   : > { %s227_s29 = sshll.u32 %s1659_s28, 4  ;;  %s241_s12 = sand.u32 1, %s1652_s23   ;;  %s228_s29 = int_to_ptr.vmem [resolvable:$true] %s227_s29 }
  0x1c   : > { %s211_s14 = sshll.u32 %s2237_s1, 4  ;;  %s1660_s13 = smov 64   ;;  %s212_s14 = int_to_ptr.hbm [resolvable:$true] %s211_s14 }
  0x1d   : > { %1363 = dma.hbm_to_vmem [thread:$0]  (!%p1361_p2), %s212_s14, 16, %s214_s16, [#allocation6]  }
  0x1e   : > { %s1661_s15 = smov 4   ;;  %s1276_s26 = sshll.u32 %s241_s12, 3 }
  0x1f   : > { %s225_s19 = sshll.u32 %s2238_s3, 4  ;;  %s1334_s1 = sshll.u32 %s1656_s24, 3  ;;  %s226_s19 = int_to_ptr.hbm [resolvable:$true] %s225_s19 }
  0x20   : > { %1366 = dma.hbm_to_vmem [thread:$0]  (!%p1361_p2), %s226_s19, 256, %s228_s29, [#allocation6], %s1660_s13, %s1660_s13, %s1661_s15  }
  0x21   : > { %s250_s18 = scalar_lea.hbm %s2218_s0, %s1334_s1  ;;  %s245_s14 = scalar_lea.vmem [#allocation2], %s1276_s26 }
  0x22   : > { %s253_s7 = sshll.u32 %s245_s14, 4  ;;  %s251_s16 = sshll.u32 %s250_s18, 4  ;;  %s254_s7 = int_to_ptr.vmem [resolvable:$true] %s253_s7  ;;  %s252_s16 = int_to_ptr.hbm [resolvable:$true] %s251_s16 }
  0x23   : > { %s242_s3 = scalar_lea.sflag [#allocation3], %s241_s12  ;;  %s1496_s27 = sshra.s32 %s252_s16, 4  ;;  %s1497_s27 = int_to_ptr.hbm [resolvable:$true] %s1496_s27 }
  0x24   : > { %s1498_s28 = scalar_lea.hbm %s1497_s27, 8  ;;  %p1500_p8 = pneg %p1788_p7 }
  0x25   : > { %p1499_p5 = scmp.ne.s32.totalorder %s1497_s27, %s1498_s28  ;;  %s1503_s13 = scalar_lea.hbm %s2218_s0, 16 }
  0x26   : > { %p1504_p1 = scmp.lt.s32.totalorder %s1497_s27, %s2218_s0  ;;  %p1505_p2 = scmp.lt.s32.totalorder %s1503_s13, %s1498_s28 }
  0x27   : > { %p1501_p9 = pnand %p1500_p8, %p1499_p5 }
  0x28   : > { %p1506_p3 = por %p1505_p2, %p1504_p1 }
  0x29   : > { %p1502_p10 = pneg %p1501_p9 }
  0x2b   : > { %p1507_p0 = pnand %p1506_p3, %p1502_p10 }
  0x2d   : > { %1510 = shalt.err (!%p1507_p0)
}
  0x2e   : > { %s1662_s26 = smov 32   ;;  %s1663_s12 = smov 2  }
  0x2f   : > { %1370 = dma.hbm_to_vmem [thread:$0]  (!%p1788_p7), %s252_s16, 128, %s254_s7, %s242_s3, %s1662_s26, %s1662_s26, %s1663_s12  }
  0x30   : > { %265 = sbr.rel (%p1770_p13) target bundleno = 638 (0x27e), region = 36  ;;  %s1810_s15 = sand.u32 (!%p1770_p13), 1, %s1648_s22  }
  0x31   : > { %s1280_s17 = sshll.u32 (!%p1770_p13), %s1810_s15, 3  ;;  %s268_s27 = scalar_lea.sflag (!%p1770_p13), [#allocation3], %s1810_s15 }
  0x32   : > { %s271_s18 = scalar_lea.vmem (!%p1770_p13), [#allocation2], %s1280_s17 }
  0x35   : > { %1627 = dma.done.wait (%p1753_p6), %s268_s27, 128  }
  0x36   : > { %1629 = vsyncadd (%p1753_p6), %s268_s27, 4294967168 }
  0x37   : > { %1631 = dma.done.wait (%p48_p4), [#allocation6], 272  }
  0x38   : > { %1633 = vsyncadd (%p48_p4), [#allocation6], 4294967024  ;;  %vm392_vm0 = vcmask 1040384   ;;  %vm400_vm1 = vcmask 1042432   ;;  %v1664_v0 = vmov 0   ;;  %v1342_v6 = vld [vmem:[#allocation7 + $0x8] sm:$0xff]  ;;  %s1111_s13 = scalar_lea.hbm %s2223_s5, %s1729_s25  ;;  %s1124_s12 = scalar_lea.hbm %s2224_s6, %s1729_s25 }
  0x39   : > { %v355_v1 = vrot.slane %v1664_v0, 7  ;;  %vm393_vm2 = vsmask.f32 256  ;;  %vm401_vm3 = vsmask.f32 2304  ;;  %s1665_s3 = smov 104  }
  0x3a   : > { %vm1823_vm4 = vmand %vm392_vm0, %vm393_vm2  ;;  %v320_v7 = vld [vmem:[%s271_s18] sm:$0x3]  ;;  %v321_v8 = vld [vmem:[%s271_s18 + $0x2] sm:$0x3]  ;;  %939 = vrot.lane.b32.xlu0 %v1342_v6, %s1665_s3  ;;  %vm416_vm6 = vsmask.f32 1280 }
  0x3b   : > { %v395_v3 = vsel %vm1823_vm4, 0, %v355_v1  ;;  %vm1829_vm5 = vmand %vm400_vm1, %vm401_vm3  ;;  %v322_v9 = vld [vmem:[%s271_s18 + $0x4] sm:$0x3]  ;;  %v323_v10 = vld [vmem:[%s271_s18 + $0x6] sm:$0x3]  ;;  %v324_v11 = vunpack.c.l.bf16 %v320_v7  ;;  %v325_v12 = vunpack.c.l.bf16 %v321_v8  ;;  %vm479_vm13 = vcmask 1042434  }
  0x3c   : > { %v1835_v5 = vsel %vm1829_vm5, %v395_v3, 0  ;;  %v326_v13 = vunpack.c.l.bf16 %v322_v9  ;;  %v327_v14 = vunpack.c.l.bf16 %v323_v10  ;;  %v1434_v15 = vld [vmem:[#allocation5] ss:$0 sm:$0xff]  ;;  %v1435_v16 = vld [vmem:[%s2220_s2] ss:$0 sm:$0xff]  ;;  %vm480_vm14 = vmor %vm392_vm0, %vm479_vm13  ;;  %vm481_vm15 = vcmask 1044484  }
  0x3d   : > { %521 = vst [vmem:[#allocation1] ss:$4 sm:$0xff] %v1835_v5  ;;  %v332_v17 = vmul.f32 %v1434_v15, %v324_v11  ;;  %v333_v18 = vmul.f32 %v1434_v15, %v325_v12  ;;  %v424_v21 = vshrl.u32 %v1835_v5, 16  ;;  %v427_v22 = vshll.u32 %v1835_v5, 16  ;;  %vm482_vm1 = vmor %vm480_vm14, %vm481_vm15  ;;  %s1666_s20 = smov 8   ;;  %s1667_s14 = smov 120  }
  0x3e   : > { %v334_v19 = vmul.f32 %v1434_v15, %v326_v13  ;;  %v335_v20 = vmul.f32 %v1434_v15, %v327_v14  ;;  %v412_v31 = vrot.slane %v1835_v5, 2  ;;  %vm417_vm7 = vsmask.f32 3336  ;;  %s1668_s7 = smov 24   ;;  %s1669_s16 = smov 16  }
  0x3f   : > { %v340_v23 = vadd.f32 %v1435_v16, %v332_v17  ;;  %v341_v24 = vadd.f32 %v1435_v16, %v333_v18  ;;  %v426_v32 = vrot.slane %v424_v21, 6  ;;  %v429_v36 = vrot.slane %v427_v22, 7  ;;  %vm418_vm10 = vmor %vm416_vm6, %vm417_vm7  ;;  %s1670_s28 = smov 112   ;;  %s1081_s30 = sand.u32 1, %s1729_s25  }
  0x40   : > { %v342_v25 = vadd.f32 %v1435_v16, %v334_v19  ;;  %v343_v26 = vadd.f32 %v1435_v16, %v335_v20  ;;  %v433_v47 = vshll.u32 %v412_v31, 16  ;;  %vm419_vm8 = vsmask.f32 5392  ;;  %v1339_v16 = vld [vmem:[#allocation7] sm:$0xff]  ;;  %s312_s17 = scalar_lea.vmem [#allocation9], %s1810_s15  ;;  %s2104_s18 = sshll.u32 %s1111_s13, 4  ;;  %s1116_s18 = int_to_ptr.hbm [resolvable:$true] %s2104_s18 }
  0x41   : > { %v344_v27 = vmax.f32 %v340_v23, 0.0  ;;  %v345_v28 = vmax.f32 %v341_v24, 0.0  ;;  %v430_v46 = vor.u32 %v429_v36, %v426_v32  ;;  %vm421_vm9 = vsmask.f32 7448  ;;  %vm420_vm11 = vmor %vm418_vm10, %vm419_vm8  ;;  %s2102_s27 = sshll.u32 %s312_s17, 4  ;;  %s2109_s11 = sshll.u32 %s1124_s12, 4  ;;  %s1114_s27 = int_to_ptr.vmem [resolvable:$true] %s2102_s27  ;;  %s1129_s11 = int_to_ptr.hbm [resolvable:$true] %s2109_s11 }
  0x42   : > { %v346_v29 = vmax.f32 %v342_v25, 0.0  ;;  %v347_v30 = vmax.f32 %v343_v26, 0.0  ;;  %v435_v56 = vrot.slane %v433_v47, 7  ;;  %vm1883_vm12 = vmor %vm420_vm11, %vm421_vm9  ;;  %vm483_vm2 = vcmask 1046534   ;;  %s1546_s19 = scalar_lea.hbm %s2223_s5, 2 }
  0x43   : > { %v348_v33 = vpack.c.bf16 %v344_v27, %v344_v27  ;;  %v349_v34 = vpack.c.bf16 %v345_v28, %v345_v28  ;;  %v431_v55 = vrot.slane %v430_v46, 2  ;;  %vm1947_vm3 = vmor %vm482_vm1, %vm483_vm2  ;;  %vm567_vm0 = vcmask 64512  }
  0x44   : > { %v350_v35 = vpack.c.bf16 %v346_v29, %v346_v29  ;;  %v351_v37 = vpack.c.bf16 %v347_v30, %v347_v30  ;;  %vm592_vm6 = vcmask 261120   ;;  %vm1073_vm7 = vcmask 57344  }
  0x45   : > { %v360_v38 = vshrl.u32 %v348_v33, 16  ;;  %v363_v39 = vshll.u32 %v348_v33, 16  ;;  %v367_v40 = vshrl.u32 %v349_v34, 16  ;;  %v370_v41 = vshll.u32 %v349_v34, 16 }
  0x46   : > { %v374_v42 = vshrl.u32 %v350_v35, 16  ;;  %v377_v43 = vshll.u32 %v350_v35, 16  ;;  %v381_v51 = vshrl.u32 %v351_v37, 16  ;;  %v384_v57 = vshll.u32 %v351_v37, 16 }
  0x47   : > { %v362_v44 = vrot.slane %v360_v38, 7  ;;  %v369_v45 = vrot.slane %v367_v40, 7  ;;  %v1891_v26 = vsel %vm1883_vm12, %v431_v55, %v435_v56 }
  0x48   : > { %v376_v48 = vrot.slane %v374_v42, 7  ;;  %v383_v61 = vrot.slane %v381_v51, 7  ;;  %v1284_v51 = vrot.slane %v1835_v5, 9 }
  0x49   : > { %v365_v49 = vor.u32 %v363_v39, %v362_v44  ;;  %v372_v50 = vor.u32 %v370_v41, %v369_v45 }
  0x4a   : > { %v379_v52 = vor.u32 %v377_v43, %v376_v48  ;;  %v386_v23 = vor.u32 %v384_v57, %v383_v61 }
  0x4b   : > { %v396_v53 = vsel %vm1823_vm4, 0, %v365_v49  ;;  %v397_v54 = vsel %vm1823_vm4, 0, %v372_v50  ;;  %v1341_v49 = vld [vmem:[#allocation7] sm:$0xff] }
  0x4c   : > { %v398_v58 = vsel %vm1823_vm4, 0, %v379_v52  ;;  %v1855_v59 = vsel %vm1829_vm5, %v396_v53, 0  ;;  %v1859_v60 = vsel %vm1829_vm5, %v397_v54, 0  ;;  %v399_v35 = vsel %vm1823_vm4, 0, %v386_v23  ;;  %937 = vrot.lane.b32.xlu1 %v1341_v49, %s1665_s3  ;;  %s318_s3 = scalar_lea.vmem [#allocation11], %s1810_s15 }
  0x4d   : > { %v1863_v62 = vsel %vm1829_vm5, %v398_v58, 0  ;;  %v413_v63 = vrot.slane %v1855_v59, 2  ;;  %v414_v0 = vrot.slane %v1859_v60, 2  ;;  %523 = vst [vmem:[#allocation1 + $0x1] ss:$4 sm:$0xff] %v1855_v59  ;;  %v438_v3 = vshrl.u32 %v1855_v59, 16 }
  0x4e   : > { %v415_v1 = vrot.slane %v1863_v62, 2  ;;  %v441_v6 = vshll.u32 %v1855_v59, 16  ;;  %v452_v7 = vshrl.u32 %v1859_v60, 16  ;;  %525 = vst [vmem:[#allocation1 + $0x2] ss:$4 sm:$0xff] %v1859_v60  ;;  %v455_v9 = vshll.u32 %v1859_v60, 16 }
  0x4f   : > { %v447_v8 = vshll.u32 %v413_v63, 16  ;;  %v461_v10 = vshll.u32 %v414_v0, 16  ;;  %v466_v11 = vshrl.u32 %v1863_v62, 16  ;;  %527 = vst [vmem:[#allocation1 + $0x3] ss:$4 sm:$0xff] %v1863_v62  ;;  %v440_v12 = vrot.slane %v438_v3, 6 }
  0x50   : > { %v443_v13 = vrot.slane %v441_v6, 7  ;;  %v454_v14 = vrot.slane %v452_v7, 6  ;;  %v469_v15 = vshll.u32 %v1863_v62, 16  ;;  %v457_v17 = vrot.slane %v455_v9, 7  ;;  %s2107_s8 = sshll.u32 %s318_s3, 4  ;;  %s1127_s8 = int_to_ptr.vmem [resolvable:$true] %s2107_s8 }
  0x51   : > { %v468_v18 = vrot.slane %v466_v11, 6  ;;  %v449_v20 = vrot.slane %v447_v8, 7  ;;  %v475_v22 = vshll.u32 %v415_v1, 16  ;;  %v463_v25 = vrot.slane %v461_v10, 7 }
  0x52   : > { %v444_v19 = vor.u32 %v443_v13, %v440_v12  ;;  %v471_v21 = vrot.slane %v469_v15, 7  ;;  %v458_v24 = vor.u32 %v457_v17, %v454_v14  ;;  %v1914_v38 = vsel %vm1829_vm5, %v399_v35, 0  ;;  %v1337_v17 = vld [vmem:[#allocation7] sm:$0xff] }
  0x53   : > { %v477_v29 = vrot.slane %v475_v22, 7  ;;  %v504_v2 = vshrl.u32 %v1914_v38, 16  ;;  %v507_v39 = vshll.u32 %v1914_v38, 16  ;;  %v502_v40 = vrot.slane %v1914_v38, 2 }
  0x54   : > { %v445_v27 = vrot.slane %v444_v19, 2  ;;  %v472_v28 = vor.u32 %v471_v21, %v468_v18  ;;  %v459_v30 = vrot.slane %v458_v24, 2  ;;  %v487_v52 = vrot.slane %v412_v31, 7 }
  0x55   : > { %v506_v41 = vrot.slane %v504_v2, 6  ;;  %v509_v42 = vrot.slane %v507_v39, 7  ;;  %v513_v44 = vshll.u32 %v502_v40, 16  ;;  %v1285_v54 = vrot.slane %v1855_v59, 9 }
  0x56   : > { %v1895_v32 = vsel %vm1883_vm12, %v445_v27, %v449_v20  ;;  %v473_v33 = vrot.slane %v472_v28, 2  ;;  %v1897_v34 = vld.sshfl [vmem:[#allocation1] sm:$0xff pattern:$0x73625140]  ;;  %v1903_v36 = vsel %vm1883_vm12, %v459_v30, %v463_v25  ;;  %v491_v55 = vrot.slane %v413_v63, 7 }
  0x57   : > { %530 = vst [vmem:[#allocation1] ss:$4 sm:$0xff] %v1891_v26  ;;  %v510_v4 = vor.u32 %v509_v42, %v506_v41  ;;  %v515_v46 = vrot.slane %v513_v44, 7  ;;  %v1286_v56 = vrot.slane %v1859_v60, 9  ;;  %v495_v57 = vrot.slane %v414_v0, 7  ;;  %v1340_v20 = vld [vmem:[#allocation7 + $0x8] sm:$0xff] }
  0x58   : > { %v1908_v37 = vsel %vm1883_vm12, %v473_v33, %v477_v29  ;;  %533 = vst [vmem:[#allocation1 + $0x1] ss:$4 sm:$0xff] %v1895_v32  ;;  %v1287_v58 = vrot.slane %v1863_v62, 9  ;;  %v499_v61 = vrot.slane %v415_v1, 7  ;;  %v1962_v31 = vsel %vm1947_vm3, %v1284_v51, %v487_v52  ;;  %v1336_v25 = vld [vmem:[#allocation7 + $0x8] sm:$0xff] }
  0x59   : > { %536 = vst [vmem:[#allocation1 + $0x2] ss:$4 sm:$0xff] %v1903_v36  ;;  %v511_v45 = vrot.slane %v510_v4, 2  ;;  %v492_v3 = vsel %vm1947_vm3, %v1285_v54, %v491_v55  ;;  %v1968_v63 = vsel %vm1947_vm3, %v1286_v56, %v495_v57  ;;  %v1288_v7 = vrot.slane %v1914_v38, 9  ;;  %601 = vmatpush.bf16.msra.mxu0 %v1336_v25 }
  0x5a   : > { %539 = vst [vmem:[#allocation1 + $0x3] ss:$4 sm:$0xff] %v1908_v37  ;;  %v1974_v0 = vsel %vm1947_vm3, %v1287_v58, %v499_v61  ;;  %v519_v8 = vrot.slane %v502_v40, 7  ;;  %vm573_vm4 = vcmask 195584   ;;  %vm570_vm5 = vcmask 130048  }
  0x5b   : > { %v1930_v48 = vsel %vm1883_vm12, %v511_v45, %v515_v46 }
  0x5c   : > { %v520_v10 = vsel %vm1947_vm3, %v1288_v7, %v519_v8 }
  0x61   : > { %v1920_v43 = vld.sshfl [vmem:[#allocation1] sm:$0xff pattern:$0x73625140] }
  0x62   : > { %544 = vst [vmem:[#allocation1] ss:$4 sm:$0xff] %v1855_v59 }
  0x63   : > { %546 = vst [vmem:[#allocation1 + $0x1] ss:$4 sm:$0xff] %v1859_v60 }
  0x64   : > { %548 = vst [vmem:[#allocation1 + $0x2] ss:$4 sm:$0xff] %v1863_v62 }
  0x65   : > { %550 = vst [vmem:[#allocation1 + $0x3] ss:$4 sm:$0xff] %v1914_v38 }
  0x6c   : > { %v1926_v47 = vld.sshfl [vmem:[#allocation1] sm:$0xff pattern:$0x73625140] }
  0x6d   : > { %555 = vst [vmem:[#allocation1] ss:$4 sm:$0xff] %v1895_v32 }
  0x6e   : > { %557 = vst [vmem:[#allocation1 + $0x1] ss:$4 sm:$0xff] %v1903_v36 }
  0x6f   : > { %559 = vst [vmem:[#allocation1 + $0x2] ss:$4 sm:$0xff] %v1908_v37 }
  0x70   : > { %562 = vst [vmem:[#allocation1 + $0x3] ss:$4 sm:$0xff] %v1930_v48 }
  0x77   : > { %v1938_v50 = vld.sshfl [vmem:[#allocation1] sm:$0xff pattern:$0x73625140] }
  0x78   : > { %641 = vst [vmem:[#allocation1] ss:$4 sm:$0xff] %v1891_v26 }
  0x79   : > { %643 = vst [vmem:[#allocation1 + $0x1] ss:$4 sm:$0xff] %v1895_v32 }
  0x7a   : > { %645 = vst [vmem:[#allocation1 + $0x2] ss:$4 sm:$0xff] %v1903_v36 }
  0x7b   : > { %647 = vst [vmem:[#allocation1 + $0x3] ss:$4 sm:$0xff] %v1908_v37 }
  0x82   : > { %v1970_v6 = vld.sshfl [vmem:[#allocation1] sm:$0xff pattern:$0x73625140] }
  0x83   : > { %650 = vst [vmem:[#allocation1] ss:$4 sm:$0xff] %v1962_v31 }
  0x84   : > { %653 = vst [vmem:[#allocation1 + $0x1] ss:$4 sm:$0xff] %v492_v3 }
  0x85   : > { %656 = vst [vmem:[#allocation1 + $0x2] ss:$4 sm:$0xff] %v1968_v63 }
  0x86   : > { %659 = vst [vmem:[#allocation1 + $0x3] ss:$4 sm:$0xff] %v1974_v0 }
  0x8d   : > { %v660_v1 = vld.sshfl [vmem:[#allocation1] sm:$0xff pattern:$0x73625140] }
  0x8e   : > { %662 = vrot.lane.b32.xlu0 %v660_v1, %s1666_s20  ;;  %664 = vst [vmem:[#allocation1] ss:$4 sm:$0xff] %v1895_v32 }
  0x8f   : > { %666 = vst [vmem:[#allocation1 + $0x1] ss:$4 sm:$0xff] %v1903_v36 }
  0x90   : > { %668 = vst [vmem:[#allocation1 + $0x2] ss:$4 sm:$0xff] %v1908_v37 }
  0x91   : > { %670 = vst [vmem:[#allocation1 + $0x3] ss:$4 sm:$0xff] %v1930_v48 }
  0x98   : > { %v1985_v9 = vld.sshfl [vmem:[#allocation1] sm:$0xff pattern:$0x73625140] }
  0x99   : > { %675 = vst [vmem:[#allocation1] ss:$4 sm:$0xff] %v492_v3 }
  0x9a   : > { %677 = vst [vmem:[#allocation1 + $0x1] ss:$4 sm:$0xff] %v1968_v63 }
  0x9b   : > { %679 = vst [vmem:[#allocation1 + $0x2] ss:$4 sm:$0xff] %v1974_v0 }
  0x9c   : > { %682 = vst [vmem:[#allocation1 + $0x3] ss:$4 sm:$0xff] %v520_v10 }
  0xa3   : > { %v683_v11 = vld.sshfl [vmem:[#allocation1] sm:$0xff pattern:$0x73625140] }
  0xa4   : > { %761 = vst [vmem:[#allocation1] ss:$4 sm:$0xff] %v1855_v59 }
  0xa5   : > { %763 = vst [vmem:[#allocation1 + $0x1] ss:$4 sm:$0xff] %v1859_v60 }
  0xa6   : > { %765 = vst [vmem:[#allocation1 + $0x2] ss:$4 sm:$0xff] %v1863_v62 }
  0xa7   : > { %767 = vst [vmem:[#allocation1 + $0x3] ss:$4 sm:$0xff] %v1914_v38 }
  0xac   : > { %v940_v19 = vpop.permute.xlu0 %939 }
  0xad   : > { %951 = vmatpush.bf16.msra.mxu3 %v940_v19 }
  0xae   : > { %v1995_v12 = vld.sshfl [vmem:[#allocation1] sm:$0xff pattern:$0x73625140] }
  0xaf   : > { %769 = vst [vmem:[#allocation1] ss:$4 sm:$0xff] %v1895_v32 }
  0xb0   : > { %771 = vst [vmem:[#allocation1 + $0x1] ss:$4 sm:$0xff] %v1903_v36 }
  0xb1   : > { %773 = vst [vmem:[#allocation1 + $0x2] ss:$4 sm:$0xff] %v1908_v37 }
  0xb2   : > { %775 = vst [vmem:[#allocation1 + $0x3] ss:$4 sm:$0xff] %v1930_v48 }
  0xb9   : > { %v776_v13 = vld.sshfl [vmem:[#allocation1] sm:$0xff pattern:$0x73625140] }
  0xba   : > { %780 = vst [vmem:[#allocation1] ss:$4 sm:$0xff] %v1859_v60  ;;  %v1338_v60 = vld [vmem:[#allocation7 + $0x8] sm:$0xff] }
  0xbb   : > { %782 = vst [vmem:[#allocation1 + $0x1] ss:$4 sm:$0xff] %v1863_v62  ;;  %709 = vrot.lane.b32.xlu2 %v1338_v60, %s1667_s14 }
  0xbc   : > { %784 = vst [vmem:[#allocation1 + $0x2] ss:$4 sm:$0xff] %v1914_v38 }
  0xbd   : > { %786 = vst [vmem:[#allocation1 + $0x3] ss:$4 sm:$0xff] %v1835_v5 }
  0xbe   : > { %v938_v22 = vpop.permute.xlu1 %937 }
  0xbf   : > { %952 = vmatpush.bf16.msra.mxu3 %v938_v22 }
  0xc4   : > { %v787_v59 = vld.sshfl [vmem:[#allocation1] sm:$0xff pattern:$0x73625140] }
  0xc5   : > { %791 = vst [vmem:[#allocation1] ss:$4 sm:$0xff] %v1903_v36 }
  0xc6   : > { %793 = vst [vmem:[#allocation1 + $0x1] ss:$4 sm:$0xff] %v1908_v37 }
  0xc7   : > { %795 = vst [vmem:[#allocation1 + $0x2] ss:$4 sm:$0xff] %v1930_v48 }
  0xc8   : > { %797 = vst [vmem:[#allocation1 + $0x3] ss:$4 sm:$0xff] %v1891_v26 }
  0xcf   : > { %v798_v14 = vld.sshfl [vmem:[#allocation1] sm:$0xff pattern:$0x73625140] }
  0xd0   : > { %876 = vst [vmem:[#allocation1] ss:$4 sm:$0xff] %v1895_v32 }
  0xd1   : > { %878 = vst [vmem:[#allocation1 + $0x1] ss:$4 sm:$0xff] %v1903_v36 }
  0xd2   : > { %880 = vst [vmem:[#allocation1 + $0x2] ss:$4 sm:$0xff] %v1908_v37 }
  0xd3   : > { %882 = vst [vmem:[#allocation1 + $0x3] ss:$4 sm:$0xff] %v1930_v48 }
  0xda   : > { %v883_v5 = vld.sshfl [vmem:[#allocation1] sm:$0xff pattern:$0x73625140] }
  0xdb   : > { %884 = vst [vmem:[#allocation1] ss:$4 sm:$0xff] %v492_v3 }
  0xdc   : > { %886 = vst [vmem:[#allocation1 + $0x1] ss:$4 sm:$0xff] %v1968_v63 }
  0xdd   : > { %888 = vst [vmem:[#allocation1 + $0x2] ss:$4 sm:$0xff] %v1974_v0 }
  0xde   : > { %890 = vst [vmem:[#allocation1 + $0x3] ss:$4 sm:$0xff] %v520_v10 }
  0xe5   : > { %v891_v62 = vld.sshfl [vmem:[#allocation1] sm:$0xff pattern:$0x73625140] }
  0xe6   : > { %893 = vrot.lane.b32.xlu0 %v891_v62, %s1666_s20  ;;  %895 = vst [vmem:[#allocation1] ss:$4 sm:$0xff] %v1903_v36 }
  0xe7   : > { %897 = vst [vmem:[#allocation1 + $0x1] ss:$4 sm:$0xff] %v1908_v37 }
  0xe8   : > { %899 = vst [vmem:[#allocation1 + $0x2] ss:$4 sm:$0xff] %v1930_v48 }
  0xe9   : > { %901 = vst [vmem:[#allocation1 + $0x3] ss:$4 sm:$0xff] %v1891_v26  ;;  %v1335_v26 = vld [vmem:[#allocation7] sm:$0xff] }
  0xea   : > { %602 = vmatpush.bf16.msra.mxu0 %v1335_v26 }
  0xee   : > { %685 = vrot.lane.b32.xlu0 %v683_v11, %s1668_s7 }
  0xf0   : > { %v902_v15 = vld.sshfl [vmem:[#allocation1] sm:$0xff pattern:$0x73625140] }
  0xf1   : > { %904 = vrot.lane.b32.xlu1 %v902_v15, %s1669_s16  ;;  %906 = vst [vmem:[#allocation1] ss:$4 sm:$0xff] %v1968_v63 }
  0xf2   : > { %908 = vst [vmem:[#allocation1 + $0x1] ss:$4 sm:$0xff] %v1974_v0 }
  0xf3   : > { %910 = vst [vmem:[#allocation1 + $0x2] ss:$4 sm:$0xff] %v520_v10 }
  0xf4   : > { %912 = vst [vmem:[#allocation1 + $0x3] ss:$4 sm:$0xff] %v1962_v31 }
  0xf6   : > { %822 = vrot.lane.b32.xlu0 %v1339_v16, %s1670_s28 }
  0xf9   : > { %707 = vrot.lane.b32.xlu1 %v1337_v17, %s1667_s14  ;;  %s1540_s14 = sshra.s32 %s1116_s18, 4  ;;  %s1541_s14 = int_to_ptr.hbm [resolvable:$true] %s1540_s14 }
  0xfa   : > { %p1547_p0 = scmp.lt.s32.totalorder %s1541_s14, %s2223_s5 }
  0xfb   : > { %v913_v18 = vld.sshfl [vmem:[#allocation1] sm:$0xff pattern:$0x73625140] }
  0xfc   : > { %915 = vrot.lane.b32.xlu2 %v913_v18, %s1668_s7 }
  0xfe   : > { %542 = vrot.lane.b32.xlu0 %v1920_v43, %s1666_s20 }
 0x100   : > { %v663_v23 = vpop.permute.xlu0 %662 }
 0x101   : > { %824 = vrot.lane.b32.xlu1 %v1340_v20, %s1670_s28  ;;  %v688_v35 = vsel %vm567_vm0, %v1970_v6, %v663_v23 }
 0x104   : > { %673 = vrot.lane.b32.xlu2 %v1985_v9, %s1669_s16 }
 0x109   : > { %789 = vrot.lane.b32.xlu1 %v787_v59, %s1669_s16 }
 0x10c   : > { %778 = vrot.lane.b32.xlu2 %v776_v13, %s1666_s20 }
 0x111   : > { %553 = vrot.lane.b32.xlu1 %v1926_v47, %s1669_s16 }
 0x114   : > { %800 = vrot.lane.b32.xlu2 %v798_v14, %s1668_s7 }
 0x115   : > { %v710_v21 = vpop.permute.xlu2 %709 }
 0x116   : > { %721 = vmatpush.bf16.msra.mxu1 %v710_v21 }
 0x11c   : > { %565 = vrot.lane.b32.xlu2 %v1938_v50, %s1668_s7  ;;  %s1542_s7 = scalar_lea.hbm %s1541_s14, 1 }
 0x11d   : > { %p1543_p4 = scmp.ne.s32.totalorder %s1541_s14, %s1542_s7  ;;  %p1548_p7 = scmp.lt.s32.totalorder %s1546_s19, %s1542_s7 }
 0x11f   : > { %p1544_p6 = pnand %p1543_p4, %p1762_p11  ;;  %p1549_p5 = por %p1548_p7, %p1547_p0 }
 0x121   : > { %p1545_p13 = pneg %p1544_p6 }
 0x123   : > { %p1550_p8 = pnand %p1549_p5, %p1545_p13 }
 0x156   : > { %v916_v24 = vpop.permute.xlu2 %915 }
 0x158   : > { %v894_v27 = vpop.permute.xlu0 %893 }
 0x159   : > { %v918_v28 = vsel %vm567_vm0, %v883_v5, %v894_v27 }
 0x15e   : > { %v674_v33 = vpop.permute.xlu2 %673 }
 0x15f   : > { %v690_v38 = vsel %vm570_vm5, %v688_v35, %v674_v33 }
 0x160   : > { %v686_v36 = vpop.permute.xlu0 %685 }
 0x161   : > { %v692_v2 = vsel %vm573_vm4, %v690_v38, %v686_v36 }
 0x163   : > { %v905_v29 = vpop.permute.xlu1 %904 }
 0x164   : > { %v920_v30 = vsel %vm570_vm5, %v918_v28, %v905_v29 }
 0x165   : > { %v922_v32 = vsel %vm573_vm4, %v920_v30, %v916_v24 }
 0x166   : > { %1324 = vmatmul.msk.bf16.vlgmr.msra.gmra.mxu3 %vm592_vm6, %v922_v32  ;;  %v779_v39 = vpop.permute.xlu2 %778 }
 0x167   : > { %v803_v43 = vsel %vm567_vm0, %v1995_v12, %v779_v39 }
 0x168   : > { %v823_v41 = vpop.permute.xlu0 %822 }
 0x16b   : > { %v708_v37 = vpop.permute.xlu1 %707 }
 0x16c   : > { %722 = vmatpush.bf16.msra.mxu1 %v708_v37 }
 0x16e   : > { %v801_v42 = vpop.permute.xlu2 %800 }
 0x16f   : > { %1306 = vmatmul.msk.bf16.vlgmr.msra.gmra.mxu1 %vm592_vm6, %v692_v2 }
 0x170   : > { %v543_v46 = vpop.permute.xlu0 %542 }
 0x171   : > { %v569_v47 = vsel %vm567_vm0, %v1897_v34, %v543_v46 }
 0x173   : > { %v825_v40 = vpop.permute.xlu1 %824 }
 0x174   : > { %836 = vmatpush.bf16.msra.mxu2 %v825_v40 }
 0x176   : > { %v566_v48 = vpop.permute.xlu2 %565 }
 0x178   : > { %837 = vmatpush.bf16.msra.mxu2 %v823_v41 }
 0x17b   : > { %v790_v4 = vpop.permute.xlu1 %789 }
 0x17c   : > { %v805_v44 = vsel %vm570_vm5, %v803_v43, %v790_v4 }
 0x17d   : > { %v807_v45 = vsel %vm573_vm4, %v805_v44, %v801_v42 }
 0x17e   : > { %1315 = vmatmul.msk.bf16.vlgmr.msra.gmra.mxu2 %vm592_vm6, %v807_v45 }
 0x183   : > { %v554_v49 = vpop.permute.xlu1 %553 }
 0x184   : > { %v572_v50 = vsel %vm570_vm5, %v569_v47, %v554_v49 }
 0x185   : > { %v575_v51 = vsel %vm573_vm4, %v572_v50, %v566_v48 }
 0x186   : > { %1297 = vmatmul.msk.bf16.vlgmr.msra.gmra.mxu0 %vm592_vm6, %v575_v51 }
 0x1e9   : > { %v954_v52 = vpop.f32.mrf.mxu3 }
 0x1ea   : > { %v987_v34 = vpack.c.bf16 %v954_v52, %v954_v52  ;;  %v983_v1 = vrot.slane %v954_v52, 4  ;;  %v969_v23 = vmul.f32 %v954_v52, %v954_v52  ;;  %v959_v29 = vsel %vm567_vm0, %v954_v52, 0.0 }
 0x1ec   : > { %v724_v53 = vpop.f32.mrf.mxu1  ;;  %v1036_v8 = vunpack.c.l.b16 %v987_v34  ;;  %v988_v13 = vpack.c.bf16 %v983_v1, %v983_v1  ;;  %v971_v38 = vsel %vm567_vm0, %v969_v23, 0.0 }
 0x1ed   : > { %v757_v54 = vpack.c.bf16 %v724_v53, %v724_v53  ;;  %v753_v55 = vrot.slane %v724_v53, 4  ;;  %v739_v15 = vmul.f32 %v724_v53, %v724_v53  ;;  %v729_v21 = vsel %vm567_vm0, %v724_v53, 0.0 }
 0x1ee   : > { %v1040_v14 = vpack.c.b16 %v1036_v8, %v1036_v8  ;;  %v1037_v17 = vunpack.c.l.b16 %v988_v13 }
 0x1ef   : > { %v995_v56 = vunpack.c.l.b16 %v757_v54  ;;  %v758_v57 = vpack.c.bf16 %v753_v55, %v753_v55  ;;  %v741_v27 = vsel %vm567_vm0, %v739_v15, 0.0 }
 0x1f0   : > { %v1041_v28 = vpack.c.b16 %v1037_v17, %v1037_v17 }
 0x1f1   : > { %v999_v58 = vpack.c.b16 %v995_v56, %v995_v56  ;;  %v996_v61 = vunpack.c.l.b16 %v758_v57  ;;  %v956_v3 = vpop.f32.mrf.mxu3 }
 0x1f2   : > { %v984_v7 = vrot.slane %v956_v3, 4  ;;  %v989_v60 = vpack.c.bf16 %v956_v3, %v956_v3  ;;  %v970_v18 = vmul.f32 %v956_v3, %v956_v3  ;;  %v960_v24 = vsel %vm567_vm0, %v956_v3, 0.0 }
 0x1f3   : > { %1003 = vrot.lane.b32.xlu0 %v999_v58, %s1666_s20  ;;  %v1000_v31 = vpack.c.b16 %v996_v61, %v996_v61  ;;  %v961_v36 = vadd.f32 %v960_v24, %v959_v29 }
 0x1f4   : > { %v726_v63 = vpop.f32.mrf.mxu1  ;;  %v990_v59 = vpack.c.bf16 %v984_v7, %v984_v7  ;;  %v1038_v20 = vunpack.c.l.b16 %v989_v60  ;;  %v972_v30 = vsel %vm567_vm0, %v970_v18, 0.0 }
 0x1f5   : > { %1005 = vrot.lane.b32.xlu1 %v1000_v31, %s1666_s20  ;;  %v754_v6 = vrot.slane %v726_v63, 4  ;;  %v759_v0 = vpack.c.bf16 %v726_v63, %v726_v63  ;;  %v740_v5 = vmul.f32 %v726_v63, %v726_v63  ;;  %v730_v16 = vsel %vm567_vm0, %v726_v63, 0.0 }
 0x1f6   : > { %v1039_v19 = vunpack.c.l.b16 %v990_v59  ;;  %v731_v25 = vadd.f32 %v730_v16, %v729_v21  ;;  %v1042_v37 = vpack.c.b16 %v1038_v20, %v1038_v20  ;;  %v973_v39 = vadd.f32 %v972_v30, %v971_v38 }
 0x1f7   : > { %v760_v9 = vpack.c.bf16 %v754_v6, %v754_v6  ;;  %v997_v10 = vunpack.c.l.b16 %v759_v0  ;;  %v742_v22 = vsel %vm567_vm0, %v740_v5, 0.0  ;;  %v962_v42 = vrot.slane %v961_v36, 4 }
 0x1f8   : > { %v743_v32 = vadd.f32 %v742_v22, %v741_v27  ;;  %v1043_v35 = vpack.c.b16 %v1039_v19, %v1039_v19  ;;  %v732_v2 = vrot.slane %v731_v25, 4  ;;  %v974_v46 = vrot.slane %v973_v39, 4 }
 0x1f9   : > { %v1001_v11 = vpack.c.b16 %v997_v10, %v997_v10  ;;  %v998_v12 = vunpack.c.l.b16 %v760_v9  ;;  %v963_v54 = vadd.f32 %v962_v42, %v961_v36 }
 0x1fa   : > { %v744_v40 = vrot.slane %v743_v32, 4  ;;  %v733_v44 = vadd.f32 %v732_v2, %v731_v25  ;;  %v975_v3 = vadd.f32 %v974_v46, %v973_v39 }
 0x1fb   : > { %1007 = vrot.lane.b32.xlu2 %v1001_v11, %s1666_s20  ;;  %v1002_v62 = vpack.c.b16 %v998_v12, %v998_v12  ;;  %v964_v9 = vrot.slane %v963_v54, 2 }
 0x1fc   : > { %v745_v50 = vadd.f32 %v744_v40, %v743_v32  ;;  %v734_v58 = vrot.slane %v733_v44, 2 }
 0x1fd   : > { %1044 = vrot.lane.b32.xlu1 %v1040_v14, %s1666_s20  ;;  %1009 = vrot.lane.b32.xlu0 %v1002_v62, %s1666_s20  ;;  %v976_v14 = vrot.slane %v975_v3, 2  ;;  %v965_v17 = vadd.f32 %v964_v9, %v963_v54 }
 0x1fe   : > { %v746_v0 = vrot.slane %v745_v50, 2  ;;  %v735_v11 = vadd.f32 %v734_v58, %v733_v44 }
 0x1ff   : > { %v977_v23 = vadd.f32 %v976_v14, %v975_v3  ;;  %v966_v29 = vrot.slane %v965_v17, 1 }
 0x200   : > { %v747_v5 = vadd.f32 %v746_v0, %v745_v50  ;;  %v736_v19 = vrot.slane %v735_v11, 1 }
 0x201   : > { %v2057_v26 = vpop.f32.mrf.mxu2  ;;  %v978_v38 = vrot.slane %v977_v23, 1  ;;  %v967_v42 = vadd.f32 %v966_v29, %v965_v17 }
 0x202   : > { %v854_v41 = vmul.f32 %v2057_v26, %v2057_v26  ;;  %v844_v4 = vsel %vm567_vm0, %v2057_v26, 0.0  ;;  %v748_v25 = vrot.slane %v747_v5, 1  ;;  %v737_v32 = vadd.f32 %v736_v19, %v735_v11 }
 0x203   : > { %v2062_v33 = vpop.f32.mrf.mxu0  ;;  %1046 = vrot.lane.b32.xlu2 %v1041_v28, %s1666_s20  ;;  %v979_v44 = vadd.f32 %v978_v38, %v977_v23 }
 0x204   : > { %v619_v43 = vmul.f32 %v2062_v33, %v2062_v33  ;;  %v609_v47 = vsel %vm567_vm0, %v2062_v33, 0.0  ;;  %v856_v53 = vsel %vm567_vm0, %v854_v41, 0.0  ;;  %v749_v2 = vadd.f32 %v748_v25, %v747_v5 }
 0x205   : > { %1050 = vrot.lane.b32.xlu1 %v1043_v35, %s1666_s20  ;;  %1048 = vrot.lane.b32.xlu0 %v1042_v37, %s1666_s20  ;;  %s1082_s20 = scalar_lea.sflag [#allocation10], %s1081_s30 }
 0x206   : > { %v621_v57 = vsel %vm567_vm0, %v619_v43, 0.0 }
 0x209   : > { %v2074_v45 = vpop.f32.mrf.mxu2 }
 0x20a   : > { %v845_v48 = vsel %vm567_vm0, %v2074_v45, 0.0  ;;  %v855_v49 = vmul.f32 %v2074_v45, %v2074_v45 }
 0x20b   : > { %v2082_v51 = vpop.f32.mrf.mxu0  ;;  %v846_v52 = vadd.f32 %v845_v48, %v844_v4 }
 0x20c   : > { %v610_v55 = vsel %vm567_vm0, %v2082_v51, 0.0  ;;  %v620_v56 = vmul.f32 %v2082_v51, %v2082_v51  ;;  %v857_v34 = vsel %vm567_vm0, %v855_v49, 0.0 }
 0x20d   : > { %v611_v61 = vadd.f32 %v610_v55, %v609_v47  ;;  %v847_v31 = vrot.slane %v846_v52, 4  ;;  %v858_v6 = vadd.f32 %v857_v34, %v856_v53 }
 0x20e   : > { %v622_v63 = vsel %vm567_vm0, %v620_v56, 0.0 }
 0x20f   : > { %v612_v1 = vrot.slane %v611_v61, 4  ;;  %v623_v7 = vadd.f32 %v622_v63, %v621_v57  ;;  %v848_v8 = vadd.f32 %v847_v31, %v846_v52  ;;  %v859_v10 = vrot.slane %v858_v6, 4 }
 0x211   : > { %v613_v12 = vadd.f32 %v612_v1, %v611_v61  ;;  %v624_v13 = vrot.slane %v623_v7, 4  ;;  %v849_v59 = vrot.slane %v848_v8, 2  ;;  %v860_v60 = vadd.f32 %v859_v10, %v858_v6 }
 0x213   : > { %v614_v62 = vrot.slane %v613_v12, 2  ;;  %v625_v15 = vadd.f32 %v624_v13, %v623_v7  ;;  %v850_v16 = vadd.f32 %v849_v59, %v848_v8  ;;  %v861_v18 = vrot.slane %v860_v60, 2 }
 0x215   : > { %v615_v20 = vadd.f32 %v614_v62, %v613_v12  ;;  %v626_v21 = vrot.slane %v625_v15, 2  ;;  %v851_v22 = vrot.slane %v850_v16, 1  ;;  %v862_v24 = vadd.f32 %v861_v18, %v860_v60 }
 0x217   : > { %v616_v27 = vrot.slane %v615_v20, 1  ;;  %v627_v28 = vadd.f32 %v626_v21, %v625_v15  ;;  %v863_v30 = vrot.slane %v862_v24, 1  ;;  %v852_v37 = vadd.f32 %v851_v22, %v850_v16 }
 0x219   : > { %v617_v35 = vadd.f32 %v616_v27, %v615_v20  ;;  %v628_v36 = vrot.slane %v627_v28, 1  ;;  %v864_v41 = vadd.f32 %v863_v30, %v862_v24 }
 0x21b   : > { %v629_v39 = vadd.f32 %v628_v36, %v627_v28  ;;  %v738_v40 = vadd.f32 %v737_v32, %v617_v35 }
 0x21d   : > { %v750_v43 = vadd.f32 %v749_v2, %v629_v39  ;;  %v853_v4 = vadd.f32 %v852_v37, %v738_v40 }
 0x21f   : > { %v865_v46 = vadd.f32 %v864_v41, %v750_v43  ;;  %v968_v47 = vadd.f32 %v967_v42, %v853_v4 }
 0x221   : > { %1074 = vst.msk [vmem:[%s312_s17] sm:$0x1] %vm1073_vm7, %v968_v47  ;;  %v980_v48 = vadd.f32 %v979_v44, %v865_v46 }
 0x222   : > { %1553 = shalt.err (!%p1550_p8)
}
 0x223   : > { %1355 = dma.vmem_to_hbm [thread:$0]  (%p1762_p11), %s1114_s27, 16, %s1116_s18, %s1082_s20   ;;  %1075 = vst.msk [vmem:[%s318_s3] sm:$0x1] %vm1073_vm7, %v980_v48 }
 0x224   : > { %s1568_s30 = sshra.s32 %s1129_s11, 4  ;;  %s1574_s17 = scalar_lea.hbm %s2224_s6, 2  ;;  %s1569_s30 = int_to_ptr.hbm [resolvable:$true] %s1568_s30 }
 0x225   : > { %s1570_s1 = scalar_lea.hbm %s1569_s30, 1  ;;  %p1575_p2 = scmp.lt.s32.totalorder %s1569_s30, %s2224_s6 }
 0x226   : > { %p1571_p9 = scmp.ne.s32.totalorder %s1569_s30, %s1570_s1  ;;  %p1576_p3 = scmp.lt.s32.totalorder %s1574_s17, %s1570_s1 }
 0x228   : > { %p1572_p10 = pnand %p1571_p9, %p1762_p11  ;;  %p1577_p4 = por %p1576_p3, %p1575_p2 }
 0x22a   : > { %p1573_p1 = pneg %p1572_p10 }
 0x22c   : > { %p1578_p6 = pnand %p1577_p4, %p1573_p1 }
 0x22e   : > { %1581 = shalt.err (!%p1578_p6)
}
 0x22f   : > { %1356 = dma.vmem_to_hbm [thread:$0]  (%p1762_p11), %s1127_s8, 16, %s1129_s11, %s1082_s20   ;;  %v639_v49 = vpack.c.bf16 %v2082_v51, %v2082_v51  ;;  %vm1027_vm8 = vcmask 123904   ;;  %v868_v53 = vrot.slane %v2057_v26, 4  ;;  %v633_v57 = vrot.slane %v2062_v33, 4 }
 0x230   : > { %s1283_s27 = sshll.u32 %s1810_s15, 4  ;;  %v637_v58 = vpack.c.bf16 %v2062_v33, %v2062_v33  ;;  %v634_v6 = vrot.slane %v2082_v51, 4  ;;  %v872_v0 = vpack.c.bf16 %v2057_v26, %v2057_v26  ;;  %s1343_s3 = sshll.u32 %s1729_s25, 4  ;;  %v869_v10 = vrot.slane %v2074_v45, 4 }
 0x231   : > { %s2147_s18 = scalar_lea.vmem [#allocation8], %s1283_s27  ;;  %v873_v54 = vpack.c.bf16 %v868_v53, %v868_v53  ;;  %v638_v34 = vpack.c.bf16 %v633_v57, %v633_v57  ;;  %s1096_s20 = scalar_lea.hbm %s2222_s4, %s1343_s3  ;;  %v874_v51 = vpack.c.bf16 %v2074_v45, %v2074_v45 }
 0x232   : > { %v640_v1 = vpack.c.bf16 %v634_v6, %v634_v6  ;;  %s1097_s16 = sshll.u32 %s2147_s18, 4  ;;  %s1099_s25 = sshll.u32 %s1096_s20, 4  ;;  %v875_v26 = vpack.c.bf16 %v869_v10, %v869_v10  ;;  %s1098_s16 = int_to_ptr.vmem [resolvable:$true] %s1097_s16  ;;  %s1100_s25 = int_to_ptr.hbm [resolvable:$true] %s1099_s25 }
 0x233   : > { %s1077_s28 = scalar_lea.sflag [#allocation4], %s1810_s15  ;;  %s1596_s19 = sshra.s32 %s1100_s25, 4  ;;  %s1597_s19 = int_to_ptr.hbm [resolvable:$true] %s1596_s19 }
 0x234   : > { %s1598_s29 = scalar_lea.hbm %s1597_s19, 16  ;;  %s1602_s1 = scalar_lea.hbm %s2222_s4, 32 }
 0x235   : > { %p1599_p13 = scmp.ne.s32.totalorder %s1597_s19, %s1598_s29  ;;  %p1603_p5 = scmp.lt.s32.totalorder %s1597_s19, %s2222_s4 }
 0x236   : > { %p1604_p8 = scmp.lt.s32.totalorder %s1602_s1, %s1598_s29 }
 0x237   : > { %p1600_p0 = pnand %p1599_p13, %p1762_p11 }
 0x238   : > { %p1605_p9 = por %p1604_p8, %p1603_p5 }
 0x239   : > { %p1601_p7 = pneg %p1600_p0 }
 0x23b   : > { %p1606_p10 = pnand %p1605_p9, %p1601_p7 }
 0x255   : > { %v1008_v50 = vpop.permute.xlu2 %1007 }
 0x256   : > { %v1021_v52 = vsel %vm567_vm0, %v639_v49, %v1008_v50 }
 0x257   : > { %1030 = vst.msk [vmem:[%s2147_s18 + $0x8] sm:$0x3] %vm1027_vm8, %v1021_v52 }
 0x25d   : > { %v1047_v55 = vpop.permute.xlu2 %1046 }
 0x25e   : > { %v1058_v56 = vsel %vm567_vm0, %v873_v54, %v1047_v55 }
 0x25f   : > { %1326 = vst.msk [vmem:[%s2147_s18 + $0x6] sm:$0x3] %vm1027_vm8, %v1058_v56 }
 0x265   : > { %v1004_v61 = vpop.permute.xlu0 %1003 }
 0x266   : > { %v1013_v31 = vsel %vm567_vm0, %v637_v58, %v1004_v61 }
 0x267   : > { %1028 = vst.msk [vmem:[%s2147_s18] sm:$0x3] %vm1027_vm8, %v1013_v31  ;;  %v1006_v3 = vpop.permute.xlu1 %1005 }
 0x268   : > { %v1017_v63 = vsel %vm567_vm0, %v638_v34, %v1006_v3 }
 0x269   : > { %1029 = vst.msk [vmem:[%s2147_s18 + $0x4] sm:$0x3] %vm1027_vm8, %v1017_v63 }
 0x26f   : > { %v1045_v33 = vpop.permute.xlu1 %1044  ;;  %v1010_v8 = vpop.permute.xlu0 %1009 }
 0x270   : > { %v1054_v7 = vsel %vm567_vm0, %v872_v0, %v1045_v33  ;;  %v1025_v9 = vsel %vm567_vm0, %v640_v1, %v1010_v8 }
 0x271   : > { %1325 = vst.msk [vmem:[%s2147_s18 + $0x2] sm:$0x3] %vm1027_vm8, %v1054_v7 }
 0x272   : > { %1031 = vst.msk [vmem:[%s2147_s18 + $0xc] sm:$0x3] %vm1027_vm8, %v1025_v9 }
 0x277   : > { %v1051_v11 = vpop.permute.xlu1 %1050  ;;  %v1049_v13 = vpop.permute.xlu0 %1048 }
 0x278   : > { %v1066_v12 = vsel %vm567_vm0, %v875_v26, %v1051_v11  ;;  %v1062_v59 = vsel %vm567_vm0, %v874_v51, %v1049_v13 }
 0x279   : > { %1328 = vst.msk [vmem:[%s2147_s18 + $0xe] sm:$0x3] %vm1027_vm8, %v1066_v12 }
 0x27a   : > { %1327 = vst.msk [vmem:[%s2147_s18 + $0xa] sm:$0x3] %vm1027_vm8, %v1062_v59 }
 0x27b   : > { %1609 = shalt.err (!%p1606_p10)
}
 0x27c   : > { %s1671_s15 = smov 32   ;;  %s1672_s17 = smov 2  }
 0x27d   : > { %1354 = dma.vmem_to_hbm [thread:$0]  (%p1762_p11), %s1098_s16, 256, %s1100_s25, %s1077_s28, %s1671_s15, %s1671_s15, %s1672_s17  }
 0x27e PF: > { %s1140_s14 = sand.u32 1, %s1644_s21   ;;  %p2248_p1 = scmp.ge.s32.totalorder %s1656_s24, 2 }
 0x27f   : > { %s1141_s7 = scalar_lea.sflag [#allocation4], %s1140_s14 }
 0x280   : > { %p1372_p2 = pnand %p2248_p1, %p1766_p12 }
 0x282   : > { %p1373_p3 = pneg %p1372_p2 }
 0x284   : > { %1635 = dma.done.wait (%p1373_p3), %s1141_s7, 256  }
 0x285   : > { %1637 = vsyncadd (%p1373_p3), %s1141_s7, 4294967040  ;;  %s2249_s27 = sadd.s32 4294967294, %s1656_s24  }
 0x286   : > { %s1150_s18 = sand.u32 1, %s2249_s27  }
 0x287   : > { %s1151_s3 = scalar_lea.sflag [#allocation10], %s1150_s18 }
 0x288   : > { %1639 = dma.done.wait (%p1373_p3), %s1151_s3, 32  }
 0x289   : > { %1641 = vsyncadd (%p1373_p3), %s1151_s3, 4294967264  ;;  %s2250_s24 = sld [smem:[#allocation16_spill]]  ;;  %s2252_s21 = smov %s1648_s22 }
 0x28a   : > { %s2251_s9 = sld [smem:[#allocation17_spill]]  ;;  %s2253_s22 = smov %s1652_s23 }
 0x28f   : > { %p24_p11 = scmp.ge.s32.totalorder %s2250_s24, 4  }
 0x290   : > { %s2254_s23 = smov %s2251_s9 }
 0x291   :  { %26 = sbr.rel (!%p24_p11) target bundleno = 11 (0xb), region = 170 }
 0x296   :  { %1165 = vsyncpa [#allocation3], 1 }
 0x297   :  { %1167 = vsyncpa [#allocation3 + $0x1], 1 }
 0x298   :  { %1168 = vsyncpa [#allocation6], 1 }
 0x299   :  { %1169 = vsyncpa [#allocation4], 1 }
 0x29a   :  { %1171 = vsyncpa [#allocation4 + $0x1], 1 }
 0x29b   :  { %1172 = vsyncpa [#allocation10], 1 }
 0x29c   :  { %1174 = vsyncpa [#allocation10 + $0x1], 1 }

</bundles_post_ra>
